<compile_context>
chip_gen: v7x
topology: tpu7x:2x2x1
jax: 0.10.0
libtpu: 0.0.40
codegen_flags: <defaults>
</compile_context>

<pallas_src>
import functools

import jax
import jax.numpy as jnp
from jax import lax
from jax.experimental import pallas as pl
from jax.experimental.pallas import tpu as pltpu


def self_attention_kernel(z_ref, bias_ref, wqkv_ref, wo_ref, out_ref,
                          *, h, d_int, mxu_dtype):
    # One grid step == B_tile batch elements.
    B, L, D = z_ref.shape
    scale = 1.0 / (float(d_int) ** 0.5)

    def mm_nt(a, b):
        # a @ b.T with f32 accumulation; b stays in PyTorch (out, in) layout.
        if mxu_dtype is not None:
            a = a.astype(mxu_dtype)
            b = b.astype(mxu_dtype)
        return lax.dot_general(a, b, (((1,), (1,)), ((), ())),
                               preferred_element_type=jnp.float32)

    # Fused Q/K/V projection on the whole folded batch: (B*L, D) @ (3D, D).T
    z = z_ref[...].reshape(B * L, D)
    qkv = mm_nt(z, wqkv_ref[...])                      # (B*L, 3D) f32
    q = qkv[:, :D] * scale                             # pre-scaled queries
    k = qkv[:, D:2 * D]
    v = qkv[:, 2 * D:3 * D]

    # Additive key mask (0 keep / -inf drop), hoisted out of the head loop.
    bias = bias_ref[...]                               # (B, 1, L) f32

    # Loop-invariant index grids (hoisted; JAX does not CSE broadcasts).
    eye = (lax.broadcasted_iota(jnp.int32, (1, L, L), 1)
           == lax.broadcasted_iota(jnp.int32, (1, L, L), 2))   # (1, L, L)
    head_ids = lax.broadcasted_iota(jnp.int32, (1, 1, h), 2)   # (1, 1, h)

    # Per-head diagonal of the softmaxed scores, assembled in registers.
    diag = jnp.zeros((B, L, h), jnp.float32)
    for hh in range(h):
        sl = slice(hh * d_int, (hh + 1) * d_int)
        qh = q[:, sl].reshape(B, L, d_int)
        kh = k[:, sl].reshape(B, L, d_int)
        if mxu_dtype is not None:
            qh = qh.astype(mxu_dtype)
            kh = kh.astype(mxu_dtype)

        # Batched-over-B score matmul for this head (one MXU launch).
        s3 = jnp.einsum('bqd,bkd->bqk', qh, kh,
                        preferred_element_type=jnp.float32) + bias   # (B, L, L)

        m = jnp.max(s3, axis=-1, keepdims=True)                      # (B, L, 1)
        ssum = jnp.sum(jnp.exp(s3 - m), axis=-1, keepdims=True)      # (B, L, 1)

        # Diagonal taken from the same masked scores as m/s (consistent
        # numerics; masked diagonal stays -inf -> probability 0).
        draw = jnp.sum(jnp.where(eye, s3, 0.0), axis=-1, keepdims=True)

        dh = jnp.exp(draw - m) * pl.reciprocal(ssum, approx=True)    # (B, L, 1)
        diag = jnp.where(head_ids == hh, dh, diag)                   # place head hh

    # y_bar formed in-register (no VMEM scratch, no per-head lane-offset stores).
    y_bar = (diag[..., None] * v.reshape(B, L, h, d_int)).reshape(B * L, D)

    # Fused output projection.
    out = mm_nt(y_bar, wo_ref[...])                    # (B*L, D) f32
    out_ref[...] = out.reshape(B, L, D).astype(out_ref.dtype)


def _choose_batch_tile(n, L, target_rows=256, min_steps=2):
    """Fold batch elements per grid step: aim for ~target_rows MXU rows, keep
    at least `min_steps` grid steps (2 TensorCores on v7x), divide n evenly."""
    max_bt_rows = max(1, target_rows // max(L, 1))
    max_bt_steps = max(1, n // min_steps) if n >= min_steps else n
    bt = max(1, min(n, max_bt_rows, max_bt_steps))
    while n % bt:
        bt -= 1
    return bt


def _vmem_limit_bytes(B, L, D, itemsize):
    weights = (3 * D * D + D * D) * itemsize * 2       # wqkv + wo, double-buffered
    act = 2 * (B * L * D) * itemsize * 2               # z / out blocks, double-buffered
    bias = B * L * 4 * 2                               # additive-bias block
    temps = (B * L * 6 * D + 6 * B * L * L + 16 * B * L) * 4  # qkv, scores, stats, y_bar
    est = 2 * (weights + act + bias + temps)           # 2x headroom
    # Generation-aware cap: v7x has only 64 MiB physical VMEM per TensorCore.
    try:
        cap = int(pltpu.get_tpu_info().vmem_capacity_bytes)
    except Exception:
        cap = 64 * 1024 * 1024                         # v7x-safe fallback
    cap = cap * 3 // 4
    return int(min(max(est, 16 * 1024 * 1024), cap))


def self_attention(Z, mask, wq, wk, wv, wo, h, *, mxu_dtype=None):
    """Z: (n, L, D); mask: key-padding mask broadcastable as (n, 1, 1, L);
    wq/wk/wv/wo: PyTorch-convention (out, in) weights (NOT transposed here).
    mxu_dtype: optional cast for MXU operands (e.g. jnp.bfloat16 on v6e/v7x)."""
    n, L, D = Z.shape
    assert D % h == 0, "d_model must be divisible by h"
    d_int = D // h

    # Precompute the additive key-mask bias once in the wrapper (0 / -inf).
    mask_arr = jnp.asarray(mask).reshape(n, 1, L)
    bias = jnp.where(mask_arr == 0, -jnp.inf, 0.0).astype(jnp.float32)

    # Fused QKV weight: still (out, in) layout, stacked along the out axis.
    wqkv = jnp.concatenate([wq, wk, wv], axis=0)       # (3D, D)

    B_tile = _choose_batch_tile(n, L)
    grid = (n // B_tile,)

    kernel = functools.partial(self_attention_kernel, h=h, d_int=d_int,
                               mxu_dtype=mxu_dtype)

    return pl.pallas_call(
        kernel,
        out_shape=jax.ShapeDtypeStruct((n, L, D), Z.dtype),
        grid=grid,
        in_specs=[
            pl.BlockSpec((B_tile, L, D), lambda b: (b, 0, 0)),   # Z (folded batch)
            pl.BlockSpec((B_tile, 1, L), lambda b: (b, 0, 0)),   # additive mask bias
            pl.BlockSpec((3 * D, D), lambda b: (0, 0)),          # fused QKV weight
            pl.BlockSpec((D, D), lambda b: (0, 0)),              # output projection
        ],
        out_specs=pl.BlockSpec((B_tile, L, D), lambda b: (b, 0, 0)),
        compiler_params=pltpu.CompilerParams(
            dimension_semantics=("parallel",),
            vmem_limit_bytes=_vmem_limit_bytes(B_tile, L, D, Z.dtype.itemsize),
        ),
    )(Z, bias, wqkv, wo)


def reference(Z, mask, wq, wk, wv, wo, h):
    """Pure-JAX mirror of the PyTorch forward (incl. the diagonal einsum)."""
    n, L, D = Z.shape
    d_int = D // h
    hp = lax.Precision.HIGHEST
    v = jnp.matmul(Z, wv.T, precision=hp)
    k = jnp.matmul(Z, wk.T, precision=hp)
    q = jnp.matmul(Z, wq.T, precision=hp)
    q4 = q.reshape(n, L, h, d_int)
    k4 = k.reshape(n, L, h, d_int)
    v4 = v.reshape(n, L, h, d_int)
    C = jnp.einsum('nqhd,nkhd->nhqk', q4, k4, precision=hp)
    masked = jnp.where(mask == 0, -jnp.inf, C)
    Ct = jax.nn.softmax(masked / (d_int ** 0.5), axis=3)
    diag = jnp.diagonal(Ct, axis1=2, axis2=3)                 # (n, h, L)
    y_bar = jnp.einsum('nhl,nlhd->nlhd', diag, v4, precision=hp).reshape(n, L, D)
    return jnp.matmul(y_bar, wo.T, precision=hp)


if __name__ == "__main__":
    n, L, d_model, h = 8, 8, 32, 4

    key = jax.random.PRNGKey(0)
    kz, kq, kk, kv, ko = jax.random.split(key, 5)

    Z = jax.random.normal(kz, (n, L, d_model), dtype=jnp.float32)
    # nn.Linear(d_model, d_model, bias=False) weights, shape (out, in)
    wq = jax.random.normal(kq, (d_model, d_model), dtype=jnp.float32) * 0.1
    wk = jax.random.normal(kk, (d_model, d_model), dtype=jnp.float32) * 0.1
    wv = jax.random.normal(kv, (d_model, d_model), dtype=jnp.float32) * 0.1
    wo = jax.random.normal(ko, (d_model, d_model), dtype=jnp.float32) * 0.1

    # Padding-style key mask (n, 1, 1, L): last two key positions masked out.
    mask = jnp.ones((n, 1, 1, L), dtype=jnp.int32).at[:, :, :, -2:].set(0)

    out = self_attention(Z, mask, wq, wk, wv, wo, h)
    out = jax.block_until_ready(out)

    ref = reference(Z, mask, wq, wk, wv, wo, h)
    assert out.shape == (n, L, d_model)
    # Tolerance allows for MXU matmul precision and the approx reciprocal.
    assert jnp.allclose(out, ref, atol=2e-3, rtol=2e-3), "mismatch vs reference"

    print("KERNEL_OK")
</pallas_src>

<mosaic_0001>
module attributes {stable_mosaic.version = 11 : i64} {
  func.func @self_attention_kernel(%arg0: i32, %arg1: memref<4x8x32xf32, #tpu.memory_space<vmem>>, %arg2: memref<4x1x8xf32, #tpu.memory_space<vmem>>, %arg3: memref<96x32xf32, #tpu.memory_space<vmem>>, %arg4: memref<32x32xf32, #tpu.memory_space<vmem>>, %arg5: memref<4x8x32xf32, #tpu.memory_space<vmem>>) attributes {dimension_semantics = [#tpu.dimension_semantics<parallel>], iteration_bounds = array<i64: 2>, scalar_prefetch = 0 : i64, scratch_operands = 0 : i64, tpu.core_type = #tpu.core_type<tc>, window_params = [{transform_indices = @transform_0, window_bounds = array<i64: 4, 8, 32>}, {transform_indices = @transform_1, window_bounds = array<i64: 4, 1, 8>}, {pipeline_mode = #tpu.pipeline_mode<synchronous>, transform_indices = @transform_2, window_bounds = array<i64: 96, 32>}, {pipeline_mode = #tpu.pipeline_mode<synchronous>, transform_indices = @transform_3, window_bounds = array<i64: 32, 32>}, {transform_indices = @transform_4, window_bounds = array<i64: 4, 8, 32>}]} {
    %c0 = arith.constant 0 : index
    %c0_0 = arith.constant 0 : index
    %c0_1 = arith.constant 0 : index
    %0 = vector.load %arg1[%c0, %c0_0, %c0_1] : memref<4x8x32xf32, #tpu.memory_space<vmem>>, vector<4x8x32xf32>
    %1 = vector.shape_cast %0 : vector<4x8x32xf32> to vector<32x32xf32>
    %c0_2 = arith.constant 0 : index
    %c0_3 = arith.constant 0 : index
    %2 = vector.load %arg3[%c0_2, %c0_3] : memref<96x32xf32, #tpu.memory_space<vmem>>, vector<96x32xf32>
    %cst = arith.constant dense<0.000000e+00> : vector<32x96xf32>
    %3 = tpu.matmul %1, %2, %cst {dimension_numbers = #tpu.dot_dimension_numbers<[1], [1], [0], [0], [0, 0, 1, 0], [], []>} : vector<32x32xf32>, vector<96x32xf32>, vector<32x96xf32> -> vector<32x96xf32>
    %4 = vector.extract_strided_slice %3 {offsets = [0, 0], sizes = [32, 32], strides = [1, 1]} : vector<32x96xf32> to vector<32x32xf32>
    %cst_4 = arith.constant 0.353553385 : f32
    %5 = vector.broadcast %cst_4 : f32 to vector<32x32xf32>
    %6 = arith.mulf %4, %5 : vector<32x32xf32>
    %7 = vector.extract_strided_slice %3 {offsets = [0, 32], sizes = [32, 32], strides = [1, 1]} : vector<32x96xf32> to vector<32x32xf32>
    %8 = vector.extract_strided_slice %3 {offsets = [0, 64], sizes = [32, 32], strides = [1, 1]} : vector<32x96xf32> to vector<32x32xf32>
    %c0_5 = arith.constant 0 : index
    %c0_6 = arith.constant 0 : index
    %c0_7 = arith.constant 0 : index
    %9 = vector.load %arg2[%c0_5, %c0_6, %c0_7] : memref<4x1x8xf32, #tpu.memory_space<vmem>>, vector<4x1x8xf32>
    %10 = tpu.iota {dimensions = array<i32: 1>} : vector<1x8x8xi32>
    %11 = tpu.iota {dimensions = array<i32: 2>} : vector<1x8x8xi32>
    %12 = arith.cmpi eq, %10, %11 : vector<1x8x8xi32>
    %13 = tpu.iota {dimensions = array<i32: 2>} : vector<1x1x4xi32>
    %cst_8 = arith.constant 0.000000e+00 : f32
    %14 = vector.broadcast %cst_8 : f32 to vector<4x8x4xf32>
    %15 = vector.extract_strided_slice %6 {offsets = [0, 0], sizes = [32, 8], strides = [1, 1]} : vector<32x32xf32> to vector<32x8xf32>
    %16 = vector.shape_cast %15 : vector<32x8xf32> to vector<4x8x8xf32>
    %17 = vector.extract_strided_slice %7 {offsets = [0, 0], sizes = [32, 8], strides = [1, 1]} : vector<32x32xf32> to vector<32x8xf32>
    %18 = vector.shape_cast %17 : vector<32x8xf32> to vector<4x8x8xf32>
    "tpu.trace_start"() <{level = 10 : i32, message = "bqd,bkd->bqk"}> : () -> ()
    %cst_9 = arith.constant dense<0.000000e+00> : vector<4x8x8xf32>
    %19 = tpu.matmul %16, %18, %cst_9 {dimension_numbers = #tpu.dot_dimension_numbers<[2], [2], [1], [1], [0, 0, 0, 1, 1, 1], [0], [0]>} : vector<4x8x8xf32>, vector<4x8x8xf32>, vector<4x8x8xf32> -> vector<4x8x8xf32>
    "tpu.trace_stop"() : () -> ()
    %20 = vector.broadcast %9 : vector<4x1x8xf32> to vector<4x8x8xf32>
    %21 = arith.addf %19, %20 : vector<4x8x8xf32>
    %cst_10 = arith.constant dense<0xFF800000> : vector<4x8xf32>
    %22 = vector.multi_reduction <maximumf>, %21, %cst_10 [2] : vector<4x8x8xf32> to vector<4x8xf32>
    %23 = vector.shape_cast %22 : vector<4x8xf32> to vector<4x8x1xf32>
    %24 = vector.broadcast %23 : vector<4x8x1xf32> to vector<4x8x8xf32>
    %25 = arith.subf %21, %24 : vector<4x8x8xf32>
    %26 = math.exp %25 : vector<4x8x8xf32>
    %cst_11 = arith.constant dense<0.000000e+00> : vector<4x8xf32>
    %27 = vector.multi_reduction <add>, %26, %cst_11 [2] : vector<4x8x8xf32> to vector<4x8xf32>
    %28 = vector.shape_cast %27 : vector<4x8xf32> to vector<4x8x1xf32>
    %cst_12 = arith.constant 0.000000e+00 : f32
    %29 = vector.shape_cast %12 : vector<1x8x8xi1> to vector<1x8x8xi1>
    %30 = vector.broadcast %29 : vector<1x8x8xi1> to vector<4x8x8xi1>
    %31 = vector.broadcast %cst_12 : f32 to vector<4x8x8xf32>
    %32 = arith.select %30, %21, %31 : vector<4x8x8xi1>, vector<4x8x8xf32>
    %cst_13 = arith.constant dense<0.000000e+00> : vector<4x8xf32>
    %33 = vector.multi_reduction <add>, %32, %cst_13 [2] : vector<4x8x8xf32> to vector<4x8xf32>
    %34 = vector.shape_cast %33 : vector<4x8xf32> to vector<4x8x1xf32>
    %35 = arith.subf %34, %23 : vector<4x8x1xf32>
    %36 = math.exp %35 : vector<4x8x1xf32>
    %37 = tpu.reciprocal %28 {approx = true} : vector<4x8x1xf32> -> vector<4x8x1xf32>
    %38 = arith.mulf %36, %37 : vector<4x8x1xf32>
    %c0_i32 = arith.constant 0 : i32
    %39 = vector.broadcast %c0_i32 : i32 to vector<1x1x4xi32>
    %40 = arith.cmpi eq, %13, %39 : vector<1x1x4xi32>
    %41 = vector.shape_cast %40 : vector<1x1x4xi1> to vector<1x1x4xi1>
    %42 = vector.broadcast %41 : vector<1x1x4xi1> to vector<4x8x4xi1>
    %43 = vector.shape_cast %38 : vector<4x8x1xf32> to vector<4x8x1xf32>
    %44 = vector.broadcast %43 : vector<4x8x1xf32> to vector<4x8x4xf32>
    %45 = arith.select %42, %44, %14 : vector<4x8x4xi1>, vector<4x8x4xf32>
    %46 = vector.extract_strided_slice %6 {offsets = [0, 8], sizes = [32, 8], strides = [1, 1]} : vector<32x32xf32> to vector<32x8xf32>
    %47 = vector.shape_cast %46 : vector<32x8xf32> to vector<4x8x8xf32>
    %48 = vector.extract_strided_slice %7 {offsets = [0, 8], sizes = [32, 8], strides = [1, 1]} : vector<32x32xf32> to vector<32x8xf32>
    %49 = vector.shape_cast %48 : vector<32x8xf32> to vector<4x8x8xf32>
    "tpu.trace_start"() <{level = 10 : i32, message = "bqd,bkd->bqk"}> : () -> ()
    %cst_14 = arith.constant dense<0.000000e+00> : vector<4x8x8xf32>
    %50 = tpu.matmul %47, %49, %cst_14 {dimension_numbers = #tpu.dot_dimension_numbers<[2], [2], [1], [1], [0, 0, 0, 1, 1, 1], [0], [0]>} : vector<4x8x8xf32>, vector<4x8x8xf32>, vector<4x8x8xf32> -> vector<4x8x8xf32>
    "tpu.trace_stop"() : () -> ()
    %51 = vector.broadcast %9 : vector<4x1x8xf32> to vector<4x8x8xf32>
    %52 = arith.addf %50, %51 : vector<4x8x8xf32>
    %cst_15 = arith.constant dense<0xFF800000> : vector<4x8xf32>
    %53 = vector.multi_reduction <maximumf>, %52, %cst_15 [2] : vector<4x8x8xf32> to vector<4x8xf32>
    %54 = vector.shape_cast %53 : vector<4x8xf32> to vector<4x8x1xf32>
    %55 = vector.broadcast %54 : vector<4x8x1xf32> to vector<4x8x8xf32>
    %56 = arith.subf %52, %55 : vector<4x8x8xf32>
    %57 = math.exp %56 : vector<4x8x8xf32>
    %cst_16 = arith.constant dense<0.000000e+00> : vector<4x8xf32>
    %58 = vector.multi_reduction <add>, %57, %cst_16 [2] : vector<4x8x8xf32> to vector<4x8xf32>
    %59 = vector.shape_cast %58 : vector<4x8xf32> to vector<4x8x1xf32>
    %cst_17 = arith.constant 0.000000e+00 : f32
    %60 = vector.shape_cast %12 : vector<1x8x8xi1> to vector<1x8x8xi1>
    %61 = vector.broadcast %60 : vector<1x8x8xi1> to vector<4x8x8xi1>
    %62 = vector.broadcast %cst_17 : f32 to vector<4x8x8xf32>
    %63 = arith.select %61, %52, %62 : vector<4x8x8xi1>, vector<4x8x8xf32>
    %cst_18 = arith.constant dense<0.000000e+00> : vector<4x8xf32>
    %64 = vector.multi_reduction <add>, %63, %cst_18 [2] : vector<4x8x8xf32> to vector<4x8xf32>
    %65 = vector.shape_cast %64 : vector<4x8xf32> to vector<4x8x1xf32>
    %66 = arith.subf %65, %54 : vector<4x8x1xf32>
    %67 = math.exp %66 : vector<4x8x1xf32>
    %68 = tpu.reciprocal %59 {approx = true} : vector<4x8x1xf32> -> vector<4x8x1xf32>
    %69 = arith.mulf %67, %68 : vector<4x8x1xf32>
    %c1_i32 = arith.constant 1 : i32
    %70 = vector.broadcast %c1_i32 : i32 to vector<1x1x4xi32>
    %71 = arith.cmpi eq, %13, %70 : vector<1x1x4xi32>
    %72 = vector.shape_cast %71 : vector<1x1x4xi1> to vector<1x1x4xi1>
    %73 = vector.broadcast %72 : vector<1x1x4xi1> to vector<4x8x4xi1>
    %74 = vector.shape_cast %69 : vector<4x8x1xf32> to vector<4x8x1xf32>
    %75 = vector.broadcast %74 : vector<4x8x1xf32> to vector<4x8x4xf32>
    %76 = arith.select %73, %75, %45 : vector<4x8x4xi1>, vector<4x8x4xf32>
    %77 = vector.extract_strided_slice %6 {offsets = [0, 16], sizes = [32, 8], strides = [1, 1]} : vector<32x32xf32> to vector<32x8xf32>
    %78 = vector.shape_cast %77 : vector<32x8xf32> to vector<4x8x8xf32>
    %79 = vector.extract_strided_slice %7 {offsets = [0, 16], sizes = [32, 8], strides = [1, 1]} : vector<32x32xf32> to vector<32x8xf32>
    %80 = vector.shape_cast %79 : vector<32x8xf32> to vector<4x8x8xf32>
    "tpu.trace_start"() <{level = 10 : i32, message = "bqd,bkd->bqk"}> : () -> ()
    %cst_19 = arith.constant dense<0.000000e+00> : vector<4x8x8xf32>
    %81 = tpu.matmul %78, %80, %cst_19 {dimension_numbers = #tpu.dot_dimension_numbers<[2], [2], [1], [1], [0, 0, 0, 1, 1, 1], [0], [0]>} : vector<4x8x8xf32>, vector<4x8x8xf32>, vector<4x8x8xf32> -> vector<4x8x8xf32>
    "tpu.trace_stop"() : () -> ()
    %82 = vector.broadcast %9 : vector<4x1x8xf32> to vector<4x8x8xf32>
    %83 = arith.addf %81, %82 : vector<4x8x8xf32>
    %cst_20 = arith.constant dense<0xFF800000> : vector<4x8xf32>
    %84 = vector.multi_reduction <maximumf>, %83, %cst_20 [2] : vector<4x8x8xf32> to vector<4x8xf32>
    %85 = vector.shape_cast %84 : vector<4x8xf32> to vector<4x8x1xf32>
    %86 = vector.broadcast %85 : vector<4x8x1xf32> to vector<4x8x8xf32>
    %87 = arith.subf %83, %86 : vector<4x8x8xf32>
    %88 = math.exp %87 : vector<4x8x8xf32>
    %cst_21 = arith.constant dense<0.000000e+00> : vector<4x8xf32>
    %89 = vector.multi_reduction <add>, %88, %cst_21 [2] : vector<4x8x8xf32> to vector<4x8xf32>
    %90 = vector.shape_cast %89 : vector<4x8xf32> to vector<4x8x1xf32>
    %cst_22 = arith.constant 0.000000e+00 : f32
    %91 = vector.shape_cast %12 : vector<1x8x8xi1> to vector<1x8x8xi1>
    %92 = vector.broadcast %91 : vector<1x8x8xi1> to vector<4x8x8xi1>
    %93 = vector.broadcast %cst_22 : f32 to vector<4x8x8xf32>
    %94 = arith.select %92, %83, %93 : vector<4x8x8xi1>, vector<4x8x8xf32>
    %cst_23 = arith.constant dense<0.000000e+00> : vector<4x8xf32>
    %95 = vector.multi_reduction <add>, %94, %cst_23 [2] : vector<4x8x8xf32> to vector<4x8xf32>
    %96 = vector.shape_cast %95 : vector<4x8xf32> to vector<4x8x1xf32>
    %97 = arith.subf %96, %85 : vector<4x8x1xf32>
    %98 = math.exp %97 : vector<4x8x1xf32>
    %99 = tpu.reciprocal %90 {approx = true} : vector<4x8x1xf32> -> vector<4x8x1xf32>
    %100 = arith.mulf %98, %99 : vector<4x8x1xf32>
    %c2_i32 = arith.constant 2 : i32
    %101 = vector.broadcast %c2_i32 : i32 to vector<1x1x4xi32>
    %102 = arith.cmpi eq, %13, %101 : vector<1x1x4xi32>
    %103 = vector.shape_cast %102 : vector<1x1x4xi1> to vector<1x1x4xi1>
    %104 = vector.broadcast %103 : vector<1x1x4xi1> to vector<4x8x4xi1>
    %105 = vector.shape_cast %100 : vector<4x8x1xf32> to vector<4x8x1xf32>
    %106 = vector.broadcast %105 : vector<4x8x1xf32> to vector<4x8x4xf32>
    %107 = arith.select %104, %106, %76 : vector<4x8x4xi1>, vector<4x8x4xf32>
    %108 = vector.extract_strided_slice %6 {offsets = [0, 24], sizes = [32, 8], strides = [1, 1]} : vector<32x32xf32> to vector<32x8xf32>
    %109 = vector.shape_cast %108 : vector<32x8xf32> to vector<4x8x8xf32>
    %110 = vector.extract_strided_slice %7 {offsets = [0, 24], sizes = [32, 8], strides = [1, 1]} : vector<32x32xf32> to vector<32x8xf32>
    %111 = vector.shape_cast %110 : vector<32x8xf32> to vector<4x8x8xf32>
    "tpu.trace_start"() <{level = 10 : i32, message = "bqd,bkd->bqk"}> : () -> ()
    %cst_24 = arith.constant dense<0.000000e+00> : vector<4x8x8xf32>
    %112 = tpu.matmul %109, %111, %cst_24 {dimension_numbers = #tpu.dot_dimension_numbers<[2], [2], [1], [1], [0, 0, 0, 1, 1, 1], [0], [0]>} : vector<4x8x8xf32>, vector<4x8x8xf32>, vector<4x8x8xf32> -> vector<4x8x8xf32>
    "tpu.trace_stop"() : () -> ()
    %113 = vector.broadcast %9 : vector<4x1x8xf32> to vector<4x8x8xf32>
    %114 = arith.addf %112, %113 : vector<4x8x8xf32>
    %cst_25 = arith.constant dense<0xFF800000> : vector<4x8xf32>
    %115 = vector.multi_reduction <maximumf>, %114, %cst_25 [2] : vector<4x8x8xf32> to vector<4x8xf32>
    %116 = vector.shape_cast %115 : vector<4x8xf32> to vector<4x8x1xf32>
    %117 = vector.broadcast %116 : vector<4x8x1xf32> to vector<4x8x8xf32>
    %118 = arith.subf %114, %117 : vector<4x8x8xf32>
    %119 = math.exp %118 : vector<4x8x8xf32>
    %cst_26 = arith.constant dense<0.000000e+00> : vector<4x8xf32>
    %120 = vector.multi_reduction <add>, %119, %cst_26 [2] : vector<4x8x8xf32> to vector<4x8xf32>
    %121 = vector.shape_cast %120 : vector<4x8xf32> to vector<4x8x1xf32>
    %cst_27 = arith.constant 0.000000e+00 : f32
    %122 = vector.shape_cast %12 : vector<1x8x8xi1> to vector<1x8x8xi1>
    %123 = vector.broadcast %122 : vector<1x8x8xi1> to vector<4x8x8xi1>
    %124 = vector.broadcast %cst_27 : f32 to vector<4x8x8xf32>
    %125 = arith.select %123, %114, %124 : vector<4x8x8xi1>, vector<4x8x8xf32>
    %cst_28 = arith.constant dense<0.000000e+00> : vector<4x8xf32>
    %126 = vector.multi_reduction <add>, %125, %cst_28 [2] : vector<4x8x8xf32> to vector<4x8xf32>
    %127 = vector.shape_cast %126 : vector<4x8xf32> to vector<4x8x1xf32>
    %128 = arith.subf %127, %116 : vector<4x8x1xf32>
    %129 = math.exp %128 : vector<4x8x1xf32>
    %130 = tpu.reciprocal %121 {approx = true} : vector<4x8x1xf32> -> vector<4x8x1xf32>
    %131 = arith.mulf %129, %130 : vector<4x8x1xf32>
    %c3_i32 = arith.constant 3 : i32
    %132 = vector.broadcast %c3_i32 : i32 to vector<1x1x4xi32>
    %133 = arith.cmpi eq, %13, %132 : vector<1x1x4xi32>
    %134 = vector.shape_cast %133 : vector<1x1x4xi1> to vector<1x1x4xi1>
    %135 = vector.broadcast %134 : vector<1x1x4xi1> to vector<4x8x4xi1>
    %136 = vector.shape_cast %131 : vector<4x8x1xf32> to vector<4x8x1xf32>
    %137 = vector.broadcast %136 : vector<4x8x1xf32> to vector<4x8x4xf32>
    %138 = arith.select %135, %137, %107 : vector<4x8x4xi1>, vector<4x8x4xf32>
    %139 = vector.shape_cast %138 : vector<4x8x4xf32> to vector<4x8x4x1xf32>
    %140 = vector.shape_cast %8 : vector<32x32xf32> to vector<4x8x4x8xf32>
    %141 = vector.broadcast %139 : vector<4x8x4x1xf32> to vector<4x8x4x8xf32>
    %142 = arith.mulf %141, %140 : vector<4x8x4x8xf32>
    %143 = vector.shape_cast %142 : vector<4x8x4x8xf32> to vector<32x32xf32>
    %c0_29 = arith.constant 0 : index
    %c0_30 = arith.constant 0 : index
    %144 = vector.load %arg4[%c0_29, %c0_30] : memref<32x32xf32, #tpu.memory_space<vmem>>, vector<32x32xf32>
    %cst_31 = arith.constant dense<0.000000e+00> : vector<32x32xf32>
    %145 = tpu.matmul %143, %144, %cst_31 {dimension_numbers = #tpu.dot_dimension_numbers<[1], [1], [0], [0], [0, 0, 1, 0], [], []>} : vector<32x32xf32>, vector<32x32xf32>, vector<32x32xf32> -> vector<32x32xf32>
    %146 = vector.shape_cast %145 : vector<32x32xf32> to vector<4x8x32xf32>
    %c0_32 = arith.constant 0 : index
    %c0_33 = arith.constant 0 : index
    %c0_34 = arith.constant 0 : index
    %147 = vector.load %arg5[%c0_32, %c0_33, %c0_34] : memref<4x8x32xf32, #tpu.memory_space<vmem>>, vector<4x8x32xf32>
    tpu.vector_store %arg5[%c0_32, %c0_33, %c0_34], %146 {strides = array<i32>} : memref<4x8x32xf32, #tpu.memory_space<vmem>>, vector<4x8x32xf32>,
    return
  }
  func.func @transform_0(%arg0: i32) -> (i32, i32, i32) {
    %c0_i32 = arith.constant 0 : i32
    %c0_i32_0 = arith.constant 0 : i32
    %c0_i32_1 = arith.constant 0 : i32
    return %arg0, %c0_i32, %c0_i32_0 : i32, i32, i32
  }
  func.func @transform_1(%arg0: i32) -> (i32, i32, i32) {
    %c0_i32 = arith.constant 0 : i32
    %c0_i32_0 = arith.constant 0 : i32
    %c0_i32_1 = arith.constant 0 : i32
    return %arg0, %c0_i32, %c0_i32_0 : i32, i32, i32
  }
  func.func @transform_2(%arg0: i32) -> (i32, i32) {
    %c0_i32 = arith.constant 0 : i32
    %c0_i32_0 = arith.constant 0 : i32
    %c0_i32_1 = arith.constant 0 : i32
    return %c0_i32, %c0_i32_0 : i32, i32
  }
  func.func @transform_3(%arg0: i32) -> (i32, i32) {
    %c0_i32 = arith.constant 0 : i32
    %c0_i32_0 = arith.constant 0 : i32
    %c0_i32_1 = arith.constant 0 : i32
    return %c0_i32, %c0_i32_0 : i32, i32
  }
  func.func @transform_4(%arg0: i32) -> (i32, i32, i32) {
    %c0_i32 = arith.constant 0 : i32
    %c0_i32_0 = arith.constant 0 : i32
    %c0_i32_1 = arith.constant 0 : i32
    return %arg0, %c0_i32, %c0_i32_0 : i32, i32, i32
  }
}

</mosaic_0001>

<bundles_post_ra>
// kernel: tpu_custom_call.1
= control target key start
LH: loop header
LB: loop body
LE: loop exit
PB: predicated region body
PF: predicated region fallthrough
CT: control target
= control target key end

     0   :  { %9 = vsyncpa [#allocation3], 0  ;;  %s4735_s0 = inlined_call_operand.vmem [shape: f32[8,8,32], index: 0, kind: input, shape index: {}]   ;;  %s4736_s1 = inlined_call_operand.vmem [shape: f32[8,1,8], index: 1, kind: input, shape index: {}]   ;;  %s4737_s2 = inlined_call_operand.vmem [shape: f32[96,32], index: 2, kind: input, shape index: {}]   ;;  %s4738_s3 = inlined_call_operand.vmem [shape: f32[32,32], index: 3, kind: input, shape index: {}]   ;;  %s4739_s4 = inlined_call_operand.hbm [shape: f32[8,8,32], index: 4, kind: output, shape index: {}]  }
   0x1   :  { %11 = vsyncpa [#allocation3 + $0x1], 0  ;;  %s3667_s15 = smov 0   ;;  %s3669_s16 = smov 0  }
   0x2   :  { %s3671_s17 = smov 0   ;;  %s3673_s18 = smov 0  }
   0x3 LB: > { %s3688_s19 = sadd.s32 4294967295, %s3623_s18   ;;  %s3108_s20 = sadd.s32 4294967294, %s3623_s18   ;;  %s3623_s18 = sphi %s3673_s18, %s4772_s18   ;;  %s3619_s17 = sphi %s3671_s17, %s4771_s17   ;;  %s3615_s16 = sphi %s3669_s16, %s4770_s16   ;;  %s3611_s15 = sphi %s3667_s15, %s4769_s15  }
   0x4   : > { %s3692_s21 = sadd.s32 1, %s3623_s18   ;;  %s118_s22 = sadd.s32 1, %s3619_s17 }
   0x5   : > { %s115_s23 = ssub.s32 %s3623_s18, %s3692_s21  ;;  %p128_p0 = scmp.ne.s32.totalorder %s3619_s17, %s3615_s16 }
   0x6   : > { %p116_p1 = scmp.eq.s32.totalorder %s115_s23, 0  ;;  %p129_p2 = scmp.eq.s32.totalorder %s3688_s19, 1 }
   0x7   : > { %p134_p3 = scmp.ne.s32.totalorder %s3615_s16, %s3611_s15  ;;  %p135_p4 = scmp.eq.s32.totalorder %s3108_s20, 1 }
   0x8   : > { %s3703_s24 = scalar_select %p116_p1, %s3619_s17, %s118_s22  }
   0x9   : > { %p3705_p5 = por %p129_p2, %p128_p0  ;;  %p3709_p6 = por %p135_p4, %p134_p3 }
   0xa   : > { %p3111_p7 = scmp.ge.s32.totalorder %s3623_s18, 1  ;;  %p176_p8 = scmp.lt.s32.totalorder %s3623_s18, 3 }
   0xc   : > { %p177_p9 = pnand %p3111_p7, %p176_p8 }
   0xd   : > { %v222_v0 = vld [vmem:[%s4737_s2] sm:$0xff] (!%p177_p9)  ;;  %v223_v1 = vld [vmem:[%s4737_s2 + $0x8] sm:$0xff] (!%p177_p9)  ;;  %vm234_vm0 = vcmask (!%p177_p9), 261120   ;;  %v224_v2 = vld [vmem:[%s4737_s2 + $0x10] sm:$0xff] (!%p177_p9)  ;;  %s3113_s7 = sshll.u32 (!%p177_p9), %s3688_s19, 2  ;;  %v4740_v23 = vmov (!%p177_p9), 0.0  }
   0xe   : > { %180 = sbr.rel (%p177_p9) target bundleno = 1561 (0x619), region = 36  ;;  %v3362_v3 = vpack.c.bf16 (!%p177_p9), %v223_v1, %v222_v0  ;;  %vm3727_vm1 = vmpackc.low (!%p177_p9), %vm234_vm0, %vm234_vm0  ;;  %v225_v5 = vld [vmem:[%s4737_s2 + $0x18] sm:$0xff] (!%p177_p9)  ;;  %p207_p10 = scmp.lt.s32.totalorder (!%p177_p9), %s3113_s7, 7  ;;  %v226_v7 = vld [vmem:[%s4737_s2 + $0x20] sm:$0xff] (!%p177_p9)  ;;  %3278 = vmatprep.subr.mxu1 (!%p177_p9), %v4740_v23  ;;  %vm3626_vm2 = vmmov (!%p177_p9), 0   ;;  %vm408_vm3 = vcmask (!%p177_p9), 64512  }
   0xf   : > { %v3368_v6 = vpack.c.bf16 (!%p177_p9), %v225_v5, %v224_v2  ;;  %v227_v8 = vld [vmem:[%s4737_s2 + $0x28] sm:$0xff] (!%p177_p9)  ;;  %v228_v11 = vld [vmem:[%s4737_s2 + $0x30] sm:$0xff] (!%p177_p9)  ;;  %v229_v12 = vld [vmem:[%s4737_s2 + $0x38] sm:$0xff] (!%p177_p9)  ;;  %3280 = vmatprep.mubr.msk.f32.mxu1 (!%p177_p9), %vm3626_vm2, %v4740_v23  ;;  %s3627_s14 = smov (!%p177_p9), 88   ;;  %s3628_s20 = smov (!%p177_p9), 96   ;;  %vm2896_vm9 = vcmask (!%p177_p9), 130048  }
  0x10   : > { %3364 = vmatprep.subr.msk.bf16.mxu0 (!%p177_p9), %vm3727_vm1, %v3362_v3  ;;  %v3374_v10 = vpack.c.bf16 (!%p177_p9), %v227_v8, %v226_v7  ;;  %v3380_v13 = vpack.c.bf16 (!%p177_p9), %v229_v12, %v228_v11  ;;  %v230_v14 = vld [vmem:[%s4737_s2 + $0x40] sm:$0xff] (!%p177_p9)  ;;  %v231_v15 = vld [vmem:[%s4737_s2 + $0x48] sm:$0xff] (!%p177_p9)  ;;  %v232_v17 = vld [vmem:[%s4737_s2 + $0x50] sm:$0xff] (!%p177_p9)  ;;  %s3629_s22 = smov (!%p177_p9), 120   ;;  %s3631_s27 = smov (!%p177_p9), 80   ;;  %v376_v12 = vlaneseq (!%p177_p9)  ;;  %vm2901_vm10 = vcmask (!%p177_p9), 195584  }
  0x11   : > { %3367 = vmatpush3.bf16.xpose.msk.msra.mxu0 (!%p177_p9), %vm3727_vm1, %v3362_v3  ;;  %v3386_v16 = vpack.c.bf16 (!%p177_p9), %v231_v15, %v230_v14  ;;  %v233_v18 = vld [vmem:[%s4737_s2 + $0x58] sm:$0xff] (!%p177_p9)  ;;  %s3632_s28 = smov (!%p177_p9), 72   ;;  %s3633_s29 = smov (!%p177_p9), 104  }
  0x12   : > { %3370 = vmatprep.subr.msk.bf16.mxu0 (!%p177_p9), %vm3727_vm1, %v3368_v6  ;;  %v3392_v19 = vpack.c.bf16 (!%p177_p9), %v233_v18, %v232_v17  ;;  %s3634_s30 = smov (!%p177_p9), 64   ;;  %v3928_v15 = vand.u32 (!%p177_p9), 127, %v376_v12  ;;  %s3637_s12 = smov (!%p177_p9), 8  }
  0x13   : > { %s3638_s13 = smov (!%p177_p9), 16   ;;  %s3181_s6 = sshll.u32 (!%p177_p9), %s3688_s19, 9 }
  0x14   : > { %vm792_vm5 = vcmp.eq.s32.totalorder (!%p177_p9), %v3928_v15, 0  ;;  %vm1183_vm6 = vcmp.eq.s32.totalorder (!%p177_p9), %v3928_v15, 1  ;;  %vm1574_vm7 = vcmp.eq.s32.totalorder (!%p177_p9), %v3928_v15, 2  ;;  %vm1965_vm8 = vcmp.eq.s32.totalorder (!%p177_p9), %v3928_v15, 3  ;;  %s4689_s9 = scalar_lea.hbm (!%p177_p9), %s4739_s4, %s3181_s6  ;;  %s3640_s19 = smov (!%p177_p9), [#allocation2]  }
  0x15   : > { %s4774_s7 = smov (!%p207_p10, %s3113_s7), 7 }
  0x16   : > { %s3114_s10 = sshll.u32 %s4774_s7, 3  ;;  %s215_s8 = scalar_lea.vmem %s4736_s1, %s4774_s7 }
  0x17   : > { %s210_s23 = scalar_lea.vmem %s4735_s0, %s3114_s10  ;;  %v3934_v18 = vld [vmem:[%s215_s8 + $0x2] ss:$0 sm:$0xff] }
  0x18   : > { %v218_v9 = vld [vmem:[%s210_s23] sm:$0xff]  ;;  %v219_v20 = vld [vmem:[%s210_s23 + $0x8] sm:$0xff]  ;;  %v220_v21 = vld [vmem:[%s210_s23 + $0x10] sm:$0xff] }
  0x19   : > { %3262 = vmatprep.mubr.msk.f32.mxu0 %vm234_vm0, %v218_v9  ;;  %3373 = vmatpush3.bf16.xpose.msk.msra.mxu0 %vm3727_vm1, %v3368_v6  ;;  %v221_v22 = vld [vmem:[%s210_s23 + $0x18] sm:$0xff]  ;;  %s3630_s23 = smov 112  }
  0x1a   : > { %3376 = vmatprep.subr.msk.bf16.mxu0 %vm3727_vm1, %v3374_v10 }
  0x21   : > { %3379 = vmatpush3.bf16.xpose.msk.msra.mxu0 %vm3727_vm1, %v3374_v10 }
  0x22   : > { %3382 = vmatprep.subr.msk.bf16.mxu0 %vm3727_vm1, %v3380_v13 }
  0x29   : > { %3385 = vmatpush3.bf16.xpose.msk.msra.mxu0 %vm3727_vm1, %v3380_v13 }
  0x2a   : > { %3388 = vmatprep.subr.msk.bf16.mxu0 %vm3727_vm1, %v3386_v16 }
  0x31   : > { %3391 = vmatpush3.bf16.xpose.msk.msra.mxu0 %vm3727_vm1, %v3386_v16  ;;  %v3930_v16 = vshrl.u32 %v376_v12, 7 }
  0x32   : > { %3394 = vmatprep.subr.msk.bf16.mxu0 %vm3727_vm1, %v3392_v19 }
  0x33   : > { %vm3943_vm4 = vcmp.eq.s32.totalorder %v3930_v16, %v3928_v15 }
  0x39   : > { %3397 = vmatpush3.bf16.xpose.msk.msra.mxu0 %vm3727_vm1, %v3392_v19  ;;  %v3936_v19 = vld [vmem:[%s215_s8] ss:$0 sm:$0xff] }
  0x3a   : > { %3268 = vmatprep.subr.mxu0 %v4740_v23 }
  0x40   : > { %3263 = vmatmul.mubr.msk.f32.vlgmr.msra.gmra.mrb[0].mxu0 %vm234_vm0, %v219_v20 }
  0x41   : > { %3265 = vmatprep.mubr.msk.f32.mxu0 %vm234_vm0, %v220_v21 }
  0x44   : > { %3266 = vmatmul.mubr.msk.f32.gmra.mrb[2].mxu0 %vm234_vm0, %v221_v22 }
  0x45   : > { %3270 = vmatprep.mubr.msk.f32.mxu0 %vm3626_vm2, %v4740_v23 }
 0x113   : > { %v3264_v24 = vpop.f32.mrb[0].mxu0 }
 0x114   : > { %v349_v25 = vpop.f32.mrb[1].mxu0  ;;  %v3805_v29 = vmul.f32 0.35355338, %v3264_v24 }
 0x115   : > { %801 = vrot.lane.b32.xlu1 %v349_v25, %s3627_s14  ;;  %v3800_v27 = vmul.f32 0.35355338, %v349_v25 }
 0x117   : > { %v3798_v26 = vpop.f32.mrb[2].mxu0 }
 0x118   : > { %641 = vrot.lane.b32.xlu0 %v3798_v26, %s3628_s20  ;;  %v359_v28 = vpop.f32.mrb[3].mxu0  ;;  %v371_v30 = vmul.f32 0.35355338, %v3798_v26 }
 0x119   : > { %799 = vrot.lane.b32.xlu1 %v3800_v27, %s3629_s22  ;;  %v370_v31 = vmul.f32 0.35355338, %v359_v28 }
 0x11c   : > { %563 = vrot.lane.b32.xlu0 %v359_v28, %s3628_s20 }
 0x11d   : > { %877 = vrot.lane.b32.xlu1 %v3805_v29, %s3629_s22 }
 0x120   : > { %879 = vrot.lane.b32.xlu0 %v3264_v24, %s3627_s14 }
 0x121   : > { %1190 = vrot.lane.b32.xlu1 %v3800_v27, %s3630_s23 }
 0x124   : > { %1035 = vrot.lane.b32.xlu0 %v3798_v26, %s3627_s14 }
 0x125   : > { %1033 = vrot.lane.b32.xlu1 %v371_v30, %s3629_s22 }
 0x128   : > { %1192 = vrot.lane.b32.xlu0 %v349_v25, %s3631_s27 }
 0x129   : > { %955 = vrot.lane.b32.xlu1 %v370_v31, %s3629_s22 }
 0x12c   : > { %957 = vrot.lane.b32.xlu0 %v359_v28, %s3627_s14  ;;  %s3639_s14 = smov 24  }
 0x12d   : > { %1268 = vrot.lane.b32.xlu1 %v3805_v29, %s3630_s23 }
 0x130   : > { %1270 = vrot.lane.b32.xlu0 %v3264_v24, %s3631_s27 }
 0x131   : > { %406 = vrot.lane.b32.xlu1 %v349_v25, %s3628_s20 }
 0x134   : > { %1348 = vrot.lane.b32.xlu0 %v359_v28, %s3631_s27 }
 0x135   : > { %1426 = vrot.lane.b32.xlu1 %v3798_v26, %s3631_s27 }
 0x138   : > { %485 = vrot.lane.b32.xlu0 %v3264_v24, %s3628_s20 }
 0x139   : > { %1424 = vrot.lane.b32.xlu1 %v371_v30, %s3630_s23 }
 0x13c   : > { %1583 = vrot.lane.b32.xlu0 %v349_v25, %s3632_s28 }
 0x13d   : > { %1661 = vrot.lane.b32.xlu1 %v3264_v24, %s3632_s28 }
 0x140   : > { %1346 = vrot.lane.b32.xlu0 %v370_v31, %s3630_s23 }
 0x141   : > { %1659 = vrot.lane.b32.xlu1 %v3805_v29, %s3633_s29 }
 0x144   : > { %1581 = vrot.lane.b32.xlu0 %v3800_v27, %s3633_s29 }
 0x145   : > { %1817 = vrot.lane.b32.xlu1 %v3798_v26, %s3632_s28 }
 0x148   : > { %1739 = vrot.lane.b32.xlu0 %v359_v28, %s3632_s28  ;;  %s203_s28 = sand.u32 1, %s3615_s16  }
 0x149   : > { %1815 = vrot.lane.b32.xlu1 %v371_v30, %s3633_s29  ;;  %s4693_s10 = scalar_lea.sflag [#allocation3], %s203_s28 }
 0x14c   : > { %1737 = vrot.lane.b32.xlu0 %v370_v31, %s3633_s29 }
 0x14d   : > { %2196 = vrot.lane.b32.xlu1 %v349_v25, %s3629_s22 }
 0x150   : > { %2204 = vrot.lane.b32.xlu0 %v349_v25, %s3630_s23 }
 0x151   : > { %2212 = vrot.lane.b32.xlu1 %v349_v25, %s3633_s29 }
 0x154   : > { %2206 = vrot.lane.b32.xlu0 %v3264_v24, %s3630_s23 }
 0x155   : > { %2198 = vrot.lane.b32.xlu1 %v3264_v24, %s3629_s22 }
 0x158   : > { %2200 = vrot.lane.b32.xlu0 %v359_v28, %s3629_s22 }
 0x159   : > { %2214 = vrot.lane.b32.xlu1 %v3264_v24, %s3633_s29 }
 0x15c   : > { %2216 = vrot.lane.b32.xlu0 %v359_v28, %s3633_s29 }
 0x15d   : > { %2208 = vrot.lane.b32.xlu1 %v359_v28, %s3630_s23 }
 0x160   : > { %2210 = vrot.lane.b32.xlu0 %v3798_v26, %s3630_s23 }
 0x161   : > { %2202 = vrot.lane.b32.xlu1 %v3798_v26, %s3629_s22 }
 0x164   : > { %2220 = vrot.lane.b32.xlu0 %v349_v25, %s3634_s30 }
 0x165   : > { %2218 = vrot.lane.b32.xlu1 %v3798_v26, %s3633_s29  ;;  %s3112_s29 = sshll.u32 %s203_s28, 5 }
 0x168   : > { %2222 = vrot.lane.b32.xlu0 %v3264_v24, %s3634_s30 }
 0x16c   : > { %2224 = vrot.lane.b32.xlu0 %v359_v28, %s3634_s30 }
 0x187   : > { %v802_v32 = vpop.permute.xlu1 %801 }
 0x18a   : > { %v642_v33 = vpop.permute.xlu0 %641 }
 0x18b   : > { %v800_v34 = vpop.permute.xlu1 %799 }
 0x18e   : > { %v564_v35 = vpop.permute.xlu0 %563 }
 0x18f   : > { %v878_v36 = vpop.permute.xlu1 %877  ;;  %3279 = vmatpush3.xpose.msk.msra.mxu1 %vm408_vm3, %v564_v35 }
 0x190   : > { %3283 = vmatprep.subr.mxu1 %v4740_v23 }
 0x192   : > { %v880_v37 = vpop.permute.xlu0 %879  ;;  %3281 = vmatmul.mubr.msk.f32.vlgmr.msra.gmra.mrb[0].mxu1 %vm408_vm3, %v370_v31 }
 0x193   : > { %v1191_v38 = vpop.permute.xlu1 %1190  ;;  %3284 = vmatpush3.xpose.msk.msra.mxu1 %vm408_vm3, %v642_v33  ;;  %3285 = vmatprep.mubr.msk.f32.mxu1 %vm3626_vm2, %v4740_v23  ;;  %v3956_v33 = vld [vmem:[%s215_s8 + $0x1] ss:$0 sm:$0xff] }
 0x194   : > { %3288 = vmatprep.subr.mxu1 %v4740_v23 }
 0x196   : > { %v1036_v39 = vpop.permute.xlu0 %1035  ;;  %3286 = vmatmul.mubr.msk.f32.vlgmr.msra.gmra.mrb[2].mxu1 %vm408_vm3, %v371_v30 }
 0x197   : > { %v1034_v40 = vpop.permute.xlu1 %1033  ;;  %3289 = vmatpush3.xpose.msk.msra.mxu1 %vm408_vm3, %v802_v32  ;;  %3290 = vmatprep.mubr.msk.f32.mxu1 %vm3626_vm2, %v4740_v23 }
 0x198   : > { %3293 = vmatprep.subr.mxu1 %v4740_v23 }
 0x19a   : > { %v1193_v41 = vpop.permute.xlu0 %1192  ;;  %3291 = vmatmul.mubr.msk.f32.vlgmr.msra.gmra.mrb[4].mxu1 %vm408_vm3, %v800_v34 }
 0x19b   : > { %v956_v42 = vpop.permute.xlu1 %955  ;;  %3294 = vmatpush3.xpose.msk.msra.mxu1 %vm408_vm3, %v880_v37  ;;  %3295 = vmatprep.mubr.msk.f32.mxu1 %vm3626_vm2, %v4740_v23  ;;  %v3962_v37 = vld [vmem:[%s215_s8 + $0x3] ss:$0 sm:$0xff] }
 0x19c   : > { %3298 = vmatprep.subr.mxu1 %v4740_v23 }
 0x19e   : > { %v958_v43 = vpop.permute.xlu0 %957  ;;  %3296 = vmatmul.mubr.msk.f32.vlgmr.msra.gmra.mrb[6].mxu1 %vm408_vm3, %v878_v36 }
 0x19f   : > { %v1269_v44 = vpop.permute.xlu1 %1268  ;;  %3299 = vmatpush3.xpose.msk.msra.mxu1 %vm408_vm3, %v958_v43  ;;  %3300 = vmatprep.mubr.msk.f32.mxu1 %vm3626_vm2, %v4740_v23 }
 0x1a0   : > { %3303 = vmatprep.subr.mxu1 %v4740_v23 }
 0x1a2   : > { %v1271_v45 = vpop.permute.xlu0 %1270  ;;  %3301 = vmatmul.mubr.msk.f32.vlgmr.msra.gmra.mrb[8].mxu1 %vm408_vm3, %v956_v42 }
 0x1a3   : > { %v407_v46 = vpop.permute.xlu1 %406  ;;  %3304 = vmatpush3.xpose.msk.msra.mxu1 %vm408_vm3, %v1036_v39  ;;  %3305 = vmatprep.mubr.msk.f32.mxu1 %vm3626_vm2, %v4740_v23 }
 0x1a4   : > { %3269 = vmatpush3.xpose.msk.msra.mxu0 %vm408_vm3, %v407_v46  ;;  %3308 = vmatprep.subr.mxu1 %v4740_v23 }
 0x1a5   : > { %3273 = vmatprep.subr.mxu0 %v4740_v23 }
 0x1a6   : > { %v1349_v47 = vpop.permute.xlu0 %1348  ;;  %3306 = vmatmul.mubr.msk.f32.vlgmr.msra.gmra.mrb[10].mxu1 %vm408_vm3, %v1034_v40 }
 0x1a7   : > { %3271 = vmatmul.mubr.msk.f32.vlgmr.msra.gmra.mrb[4].mxu0 %vm408_vm3, %v3800_v27  ;;  %v1427_v48 = vpop.permute.xlu1 %1426  ;;  %3309 = vmatpush3.xpose.msk.msra.mxu1 %vm408_vm3, %v1193_v41 }
 0x1a8   : > { %3310 = vmatprep.mubr.msk.f32.mxu1 %vm3626_vm2, %v4740_v23  ;;  %3313 = vmatprep.subr.mxu1 %v4740_v23 }
 0x1a9   : > { %3275 = vmatprep.mubr.msk.f32.mxu0 %vm3626_vm2, %v4740_v23 }
 0x1aa   : > { %v486_v49 = vpop.permute.xlu0 %485  ;;  %3311 = vmatmul.mubr.msk.f32.vlgmr.msra.gmra.mrb[12].mxu1 %vm408_vm3, %v1191_v38 }
 0x1ab   : > { %3274 = vmatpush3.xpose.msk.msra.mxu0 %vm408_vm3, %v486_v49  ;;  %v1425_v50 = vpop.permute.xlu1 %1424  ;;  %3314 = vmatpush3.xpose.msk.msra.mxu1 %vm408_vm3, %v1271_v45 }
 0x1ac   : > { %3315 = vmatprep.mubr.msk.f32.mxu1 %vm3626_vm2, %v4740_v23  ;;  %3318 = vmatprep.subr.mxu1 %v4740_v23 }
 0x1ad   : > { %3333 = vmatprep.subr.mxu0 %v4740_v23 }
 0x1ae   : > { %v1584_v51 = vpop.permute.xlu0 %1583  ;;  %3276 = vmatmul.mubr.msk.f32.vlgmr.msra.gmra.mrb[6].mxu0 %vm408_vm3, %v3805_v29  ;;  %3316 = vmatmul.mubr.msk.f32.vlgmr.msra.gmra.mrb[14].mxu1 %vm408_vm3, %v1269_v44 }
 0x1af   : > { %v1662_v52 = vpop.permute.xlu1 %1661  ;;  %3319 = vmatpush3.xpose.msk.msra.mxu1 %vm408_vm3, %v1349_v47  ;;  %3320 = vmatprep.mubr.msk.f32.mxu1 %vm3626_vm2, %v4740_v23 }
 0x1b0   : > { %3334 = vmatpush3.xpose.msk.msra.mxu0 %vm408_vm3, %v1662_v52  ;;  %3323 = vmatprep.subr.mxu1 %v4740_v23 }
 0x1b1   : > { %3335 = vmatprep.mubr.msk.f32.mxu0 %vm3626_vm2, %v4740_v23  ;;  %3343 = vmatprep.subr.mxu0 %v4740_v23 }
 0x1b2   : > { %v1347_v53 = vpop.permute.xlu0 %1346 }
 0x1b3   : > { %v1660_v54 = vpop.permute.xlu1 %1659  ;;  %3321 = vmatmul.mubr.msk.f32.vlgmr.msra.gmra.mrb[16].mxu1 %vm408_vm3, %v1347_v53 }
 0x1b4   : > { %3324 = vmatpush3.xpose.msk.msra.mxu1 %vm408_vm3, %v1427_v48  ;;  %3336 = vmatmul.mubr.msk.f32.vlgmr.msra.gmra.mrb[8].mxu0 %vm408_vm3, %v1660_v54 }
 0x1b5   : > { %3325 = vmatprep.mubr.msk.f32.mxu1 %vm3626_vm2, %v4740_v23  ;;  %3328 = vmatprep.subr.mxu1 %v4740_v23 }
 0x1b6   : > { %v1582_v55 = vpop.permute.xlu0 %1581  ;;  %3345 = vmatprep.mubr.msk.f32.mxu0 %vm3626_vm2, %v4740_v23 }
 0x1b7   : > { %v1818_v56 = vpop.permute.xlu1 %1817  ;;  %3326 = vmatmul.mubr.msk.f32.vlgmr.msra.gmra.mrb[18].mxu1 %vm408_vm3, %v1425_v50 }
 0x1b8   : > { %3329 = vmatpush3.xpose.msk.msra.mxu1 %vm408_vm3, %v1584_v51  ;;  %3344 = vmatpush3.xpose.msk.msra.mxu0 %vm408_vm3, %v1818_v56 }
 0x1b9   : > { %3330 = vmatprep.mubr.msk.f32.mxu1 %vm3626_vm2, %v4740_v23  ;;  %3338 = vmatprep.subr.mxu1 %v4740_v23 }
 0x1ba   : > { %v1740_v57 = vpop.permute.xlu0 %1739 }
 0x1bb   : > { %v1816_v58 = vpop.permute.xlu1 %1815  ;;  %3331 = vmatmul.mubr.msk.f32.vlgmr.msra.gmra.mrb[20].mxu1 %vm408_vm3, %v1582_v55 }
 0x1bc   : > { %3339 = vmatpush3.xpose.msk.msra.mxu1 %vm408_vm3, %v1740_v57  ;;  %3346 = vmatmul.mubr.msk.f32.vlgmr.msra.gmra.mrb[10].mxu0 %vm408_vm3, %v1816_v58 }
 0x1bd   : > { %3340 = vmatprep.mubr.msk.f32.mxu1 %vm3626_vm2, %v4740_v23 }
 0x1be   : > { %v1738_v59 = vpop.permute.xlu0 %1737 }
 0x1bf   : > { %v2197_v60 = vpop.permute.xlu1 %2196  ;;  %3341 = vmatmul.mubr.msk.f32.vlgmr.msra.gmra.mrb[22].mxu1 %vm408_vm3, %v1738_v59 }
 0x1c2   : > { %v2205_v61 = vpop.permute.xlu0 %2204 }
 0x1c3   : > { %v2213_v62 = vpop.permute.xlu1 %2212 }
 0x1c6   : > { %v2207_v63 = vpop.permute.xlu0 %2206 }
 0x1c7   : > { %2238 = vrot.lane.b32.xlu0 %v2207_v63, %s3634_s30  ;;  %v2199_v0 = vpop.permute.xlu1 %2198 }
 0x1c8   : > { %2230 = vrot.lane.b32.xlu1 %v2199_v0, %s3634_s30 }
 0x1ca   : > { %v2201_v2 = vpop.permute.xlu0 %2200 }
 0x1cb   : > { %2236 = vrot.lane.b32.xlu0 %v2205_v61, %s3634_s30  ;;  %v2215_v1 = vpop.permute.xlu1 %2214 }
 0x1cc   : > { %2246 = vrot.lane.b32.xlu1 %v2215_v1, %s3634_s30 }
 0x1d0   : > { %2228 = vrot.lane.b32.xlu1 %v2197_v60, %s3634_s30 }
 0x1d4   : > { %2244 = vrot.lane.b32.xlu1 %v2213_v62, %s3634_s30 }
 0x1d8   : > { %2232 = vrot.lane.b32.xlu1 %v2201_v2, %s3634_s30 }
 0x265   : > { %v636_v3 = vpop.f32.mrb[0].mxu1 }
 0x266   : > { %v3282_v5 = vpop.f32.mrb[1].mxu1  ;;  %v3948_v27 = vadd.f32 %v3934_v18, %v636_v3 }
 0x268   : > { %v724_v36 = vsel %vm408_vm3, %v3948_v27, -inf  ;;  %v758_v45 = vsel %vm3943_vm4, %v3948_v27, 0.0 }
 0x269   : > { %v714_v6 = vpop.f32.mrb[2].mxu1  ;;  %v766_v51 = vsel %vm408_vm3, %v758_v45, 0.0 }
 0x26a   : > { %v3287_v7 = vpop.f32.mrb[3].mxu1  ;;  %v3973_v43 = vadd.f32 %v3962_v37, %v714_v6 }
 0x26c   : > { %v727_v53 = vsel %vm408_vm3, %v3973_v43, -inf  ;;  %v759_v61 = vsel %vm3943_vm4, %v3973_v43, 0.0 }
 0x26d   : > { %v873_v8 = vpop.f32.mrb[4].mxu1  ;;  %v769_v5 = vsel %vm408_vm3, %v759_v61, 0.0 }
 0x26e   : > { %v3292_v9 = vpop.f32.mrb[5].mxu1  ;;  %v3984_v52 = vadd.f32 %v3936_v19, %v873_v8 }
 0x270   : > { %v1147_v59 = vsel %vm3943_vm4, %v3984_v52, 0.0 }
 0x271   : > { %v3920_v10 = vpop.f32.mrb[6].mxu1  ;;  %v1151_v3 = vsel %vm408_vm3, %v1147_v59, 0.0 }
 0x272   : > { %v3297_v11 = vpop.f32.mrb[7].mxu1 }
 0x275   : > { %v3922_v13 = vpop.f32.mrb[8].mxu1 }
 0x276   : > { %v3302_v14 = vpop.f32.mrb[9].mxu1  ;;  %v4019_v12 = vadd.f32 %v3934_v18, %v3922_v13 }
 0x277   : > { %v1111_v14 = vsel %vm408_vm3, %v3984_v52, -inf }
 0x279   : > { %v3932_v17 = vpop.f32.mrb[10].mxu1 }
 0x27a   : > { %v480_v20 = vpop.f32.mrb[4].mxu0  ;;  %v3307_v21 = vpop.f32.mrb[11].mxu1 }
 0x27b   : > { %v3939_v22 = vadd.f32 %v3936_v19, %v480_v20  ;;  %v3272_v24 = vpop.f32.mrb[5].mxu0  ;;  %v1117_v21 = vsel %vm408_vm3, %v4019_v12, -inf }
 0x27c   : > { %v4030_v24 = vadd.f32 %v3956_v33, %v3920_v10 }
 0x27d   : > { %v1264_v28 = vpop.f32.mrb[12].mxu1  ;;  %v718_v29 = vsel %vm408_vm3, %v3939_v22, -inf  ;;  %v756_v30 = vsel %vm3943_vm4, %v3939_v22, 0.0 }
 0x27e   : > { %719 = vmax.xlane.f32.xlu0 %v718_v29  ;;  %v3312_v31 = vpop.f32.mrb[13].mxu1  ;;  %v760_v32 = vsel %vm408_vm3, %v756_v30, 0.0  ;;  %v4024_v20 = vadd.f32 %v3936_v19, %v1264_v28  ;;  %v1148_v10 = vsel %vm3943_vm4, %v4030_v24, 0.0 }
 0x27f   : > { %761 = vadd.xlane.f32.xlu1 %v760_v32  ;;  %v1154_v32 = vsel %vm408_vm3, %v1148_v10, 0.0 }
 0x280   : > { %v1502_v29 = vsel %vm408_vm3, %v4024_v20, -inf  ;;  %v1538_v28 = vsel %vm3943_vm4, %v4024_v20, 0.0 }
 0x281   : > { %v558_v34 = vpop.f32.mrb[6].mxu0  ;;  %v3958_v35 = vpop.f32.mrb[14].mxu1  ;;  %v1542_v31 = vsel %vm408_vm3, %v1538_v28, 0.0 }
 0x282   : > { %v3965_v38 = vadd.f32 %v3956_v33, %v558_v34  ;;  %v3277_v39 = vpop.f32.mrb[7].mxu0  ;;  %725 = vmax.xlane.f32.xlu0 %v724_v36  ;;  %v3317_v40 = vpop.f32.mrb[15].mxu1  ;;  %v1149_v34 = vsel %vm3943_vm4, %v4019_v12, 0.0 }
 0x283   : > { %v4056_v39 = vadd.f32 %v3962_v37, %v3932_v17 }
 0x284   : > { %v721_v41 = vsel %vm408_vm3, %v3965_v38, -inf  ;;  %v757_v42 = vsel %vm3943_vm4, %v3965_v38, 0.0 }
 0x285   : > { %722 = vmax.xlane.f32.xlu1 %v721_v41  ;;  %v763_v44 = vsel %vm408_vm3, %v757_v42, 0.0  ;;  %v1120_v40 = vsel %vm408_vm3, %v4056_v39, -inf  ;;  %v1150_v41 = vsel %vm3943_vm4, %v4056_v39, 0.0  ;;  %v4066_v42 = vadd.f32 %v3956_v33, %v3958_v35 }
 0x286   : > { %764 = vadd.xlane.f32.xlu0 %v763_v44  ;;  %v1420_v46 = vpop.f32.mrb[16].mxu1  ;;  %v1160_v44 = vsel %vm408_vm3, %v1150_v41, 0.0 }
 0x287   : > { %v3322_v47 = vpop.f32.mrb[17].mxu1  ;;  %v1733_v48 = vpop.f32.mrb[8].mxu0  ;;  %v4045_v30 = vadd.f32 %v3934_v18, %v1420_v46  ;;  %v1505_v17 = vsel %vm408_vm3, %v4066_v42, -inf  ;;  %v1539_v45 = vsel %vm3943_vm4, %v4066_v42, 0.0 }
 0x288   : > { %v3980_v49 = vadd.f32 %v3956_v33, %v1733_v48  ;;  %v3337_v50 = vpop.f32.mrb[9].mxu0  ;;  %v2209_v46 = vpop.permute.xlu1 %2208  ;;  %v1545_v48 = vsel %vm408_vm3, %v1539_v45, 0.0 }
 0x289   : > { %767 = vadd.xlane.f32.xlu1 %v766_v51  ;;  %v1508_v36 = vsel %vm408_vm3, %v4045_v30, -inf  ;;  %v2217_v47 = vpop.permute.xlu0 %2216  ;;  %v1540_v33 = vsel %vm3943_vm4, %v4045_v30, 0.0 }
 0x28a   : > { %728 = vmax.xlane.f32.xlu0 %v727_v53  ;;  %v3988_v54 = vpop.f32.mrb[18].mxu1  ;;  %v1930_v55 = vsel %vm3943_vm4, %v3980_v49, 0.0  ;;  %v1896_v57 = vsel %vm408_vm3, %v3980_v49, -inf  ;;  %v1548_v51 = vsel %vm408_vm3, %v1540_v33, 0.0 }
 0x28b   : > { %v3327_v56 = vpop.f32.mrb[19].mxu1  ;;  %v1936_v58 = vsel %vm408_vm3, %v1930_v55, 0.0  ;;  %v4081_v50 = vadd.f32 %v3962_v37, %v3988_v54 }
 0x28c   : > { %v2203_v35 = vpop.permute.xlu1 %2202 }
 0x28d   : > { %1897 = vmax.xlane.f32.xlu1 %v1896_v57  ;;  %v1511_v53 = vsel %vm408_vm3, %v4081_v50, -inf  ;;  %v2211_v55 = vpop.permute.xlu0 %2210  ;;  %v1541_v61 = vsel %vm3943_vm4, %v4081_v50, 0.0 }
 0x28e   : > { %1937 = vadd.xlane.f32.xlu0 %v1936_v58  ;;  %v1655_v60 = vpop.f32.mrb[20].mxu1 }
 0x28f   : > { %v4003_v62 = vadd.f32 %v3936_v19, %v1655_v60  ;;  %v3332_v63 = vpop.f32.mrb[21].mxu1  ;;  %v1889_v0 = vpop.f32.mrb[10].mxu0  ;;  %v1114_v19 = vsel %vm408_vm3, %v4030_v24, -inf }
 0x290   : > { %v4006_v1 = vadd.f32 %v3962_v37, %v1889_v0  ;;  %v3347_v2 = vpop.f32.mrb[11].mxu0  ;;  %v2219_v58 = vpop.permute.xlu1 %2218  ;;  %v1551_v0 = vsel %vm408_vm3, %v1541_v61, 0.0 }
 0x291   : > { %1152 = vadd.xlane.f32.xlu1 %v1151_v3  ;;  %v1893_v37 = vsel %vm408_vm3, %v4003_v62, -inf  ;;  %v1929_v54 = vsel %vm3943_vm4, %v4003_v62, 0.0 }
 0x292   : > { %770 = vadd.xlane.f32.xlu0 %v769_v5  ;;  %v1811_v6 = vpop.f32.mrb[22].mxu1  ;;  %v1932_v7 = vsel %vm3943_vm4, %v4006_v1, 0.0  ;;  %v1902_v13 = vsel %vm408_vm3, %v4006_v1, -inf  ;;  %v1933_v56 = vsel %vm408_vm3, %v1929_v54, 0.0 }
 0x293   : > { %v4014_v8 = vadd.f32 %v3934_v18, %v1811_v6  ;;  %v3342_v9 = vpop.f32.mrb[23].mxu1  ;;  %v1942_v11 = vsel %vm408_vm3, %v1932_v7, 0.0  ;;  %v1157_v18 = vsel %vm408_vm3, %v1149_v34, 0.0 }
 0x294   : > { %v4101_v59 = vpop.permute.xlu1 %2230 }
 0x295   : > { %1943 = vadd.xlane.f32.xlu1 %v1942_v11  ;;  %v1899_v57 = vsel %vm408_vm3, %v4014_v8, -inf  ;;  %v1931_v2 = vsel %vm3943_vm4, %v4014_v8, 0.0 }
 0x296   : > { %1112 = vmax.xlane.f32.xlu0 %v1111_v14  ;;  %v1939_v6 = vsel %vm408_vm3, %v1931_v2, 0.0 }
 0x298   : > { %v4109_v63 = vpop.permute.xlu1 %2246 }
 0x299   : > { %1118 = vmax.xlane.f32.xlu1 %v1117_v21 }
 0x29a   : > { %1903 = vmax.xlane.f32.xlu0 %v1902_v13 }
 0x29c   : > { %v4117_v5 = vpop.permute.xlu1 %2228 }
 0x29d   : > { %1503 = vmax.xlane.f32.xlu1 %v1502_v29 }
 0x29e   : > { %1115 = vmax.xlane.f32.xlu0 %v1114_v19 }
 0x2a0   : > { %v4122_v9 = vpop.permute.xlu1 %2244 }
 0x2a1   : > { %1543 = vadd.xlane.f32.xlu1 %v1542_v31 }
 0x2a2   : > { %1155 = vadd.xlane.f32.xlu0 %v1154_v32 }
 0x2a4   : > { %v4126_v14 = vpop.permute.xlu1 %2232 }
 0x2a5   : > { %1509 = vmax.xlane.f32.xlu1 %v1508_v36 }
 0x2a6   : > { %1158 = vadd.xlane.f32.xlu0 %v1157_v18 }
 0x2aa   : > { %1121 = vmax.xlane.f32.xlu0 %v1120_v40 }
 0x2ae   : > { %1161 = vadd.xlane.f32.xlu0 %v1160_v44 }
 0x2b2   : > { %1506 = vmax.xlane.f32.xlu0 %v1505_v17 }
 0x2b6   : > { %1546 = vadd.xlane.f32.xlu0 %v1545_v48  ;;  %2248 = vrot.lane.b32.xlu1 %v2217_v47, %s3634_s30 }
 0x2ba   : > { %1549 = vadd.xlane.f32.xlu0 %v1548_v51  ;;  %2234 = vrot.lane.b32.xlu1 %v2203_v35, %s3634_s30 }
 0x2be   : > { %1512 = vmax.xlane.f32.xlu0 %v1511_v53 }
 0x2d4   : > { %2240 = vrot.lane.b32.xlu0 %v2209_v46, %s3634_s30 }
 0x2d8   : > { %2226 = vrot.lane.b32.xlu0 %v3798_v26, %s3634_s30  ;;  %v4099_v26 = vpop.permute.xlu0 %2220 }
 0x2dc   : > { %2242 = vrot.lane.b32.xlu0 %v2211_v55, %s3634_s30  ;;  %v4103_v60 = vpop.permute.xlu0 %2222 }
 0x2de   : > { %1894 = vmax.xlane.f32.xlu1 %v1893_v37 }
 0x2e0   : > { %v4115_v3 = vpop.permute.xlu0 %2224 }
 0x2e2   : > { %1934 = vadd.xlane.f32.xlu1 %v1933_v56 }
 0x2e4   : > { %v4120_v7 = vpop.permute.xlu0 %2238 }
 0x2e6   : > { %1900 = vmax.xlane.f32.xlu1 %v1899_v57 }
 0x2e8   : > { %v4124_v11 = vpop.permute.xlu0 %2236 }
 0x2f7   : > { %2250 = vrot.lane.b32.xlu1 %v2219_v58, %s3634_s30  ;;  %s205_s30 = scalar_lea.vmem [#allocation2], %s3112_s29 }
 0x2f8   : > { %s3037_s5 = sshll.u32 %s205_s30, 4  ;;  %s4684_s5 = int_to_ptr.vmem [resolvable:$true] %s3037_s5 }
 0x2f9   : > { %s3561_s11 = scalar_lea.vmem %s4684_s5, 512 }
 0x2fa   : > { %p3562_p11 = scmp.ne.s32.totalorder %s4684_s5, %s3561_s11 }
 0x2fb   : > { %1552 = vadd.xlane.f32.xlu0 %v1551_v0 }
 0x2fc   : > { %p3563_p12 = pnand %p3562_p11, %p3705_p5 }
 0x2fe   : > { %p3564_p13 = pneg %p3563_p12 }
 0x2ff   : > { %1940 = vadd.xlane.f32.xlu0 %v1939_v6 }
 0x30b   : > { %v4128_v21 = vpop.xlane.xlu0 %719 }
 0x30c   : > { %v730_v25 = vsub.f32 %v3939_v22, %v4128_v21  ;;  %v4132_v29 = vpop.xlane.xlu1 %761 }
 0x30e   : > { %v734_v13 = vmul.f32 1.442695, %v730_v25  ;;  %v3635_v25 = vmov 1983009808  }
 0x30f   : > { %v4134_v19 = vpop.xlane.xlu0 %725 }
 0x310   : > { %3465 = vpow2.f32 %v734_v13  ;;  %v732_v28 = vsub.f32 %v3948_v27, %v4134_v19 }
 0x312   : > { %v4138_v10 = vpop.xlane.xlu1 %722  ;;  %v738_v22 = vmul.f32 1.442695, %v732_v28 }
 0x313   : > { %v731_v31 = vsub.f32 %v3965_v38, %v4138_v10  ;;  %v4142_v32 = vpop.xlane.xlu0 %764 }
 0x315   : > { %v736_v36 = vmul.f32 1.442695, %v731_v31 }
 0x316   : > { %v4146_v18 = vpop.xlane.xlu1 %767 }
 0x317   : > { %3467 = vpow2.f32 %v736_v36  ;;  %v774_v40 = vsub.f32 %v4146_v18, %v4134_v19  ;;  %v4150_v41 = vpop.xlane.xlu0 %728  ;;  %v4748_v18 = vsub.f32 %v4142_v32, %v4138_v10 }
 0x318   : > { %3469 = vpow2.f32 %v738_v22  ;;  %v733_v27 = vsub.f32 %v3973_v43, %v4150_v41 }
 0x31a   : > { %v3466_v38 = vpop.eup %3465  ;;  %v4154_v44 = vpop.xlane.xlu1 %1897  ;;  %v740_v48 = vmul.f32 1.442695, %v733_v27 }
 0x31b   : > { %v1906_v17 = vsub.f32 %v3980_v49, %v4154_v44  ;;  %v4158_v45 = vpop.xlane.xlu0 %1937  ;;  %v742_v46 = vsel %vm408_vm3, %v3466_v38, 0.0 }
 0x31c   : > { %743 = vadd.xlane.f32.xlu0 %v742_v46 }
 0x31d   : > { %v1911_v33 = vmul.f32 1.442695, %v1906_v17 }
 0x31e   : > { %v4163_v35 = vpop.xlane.xlu1 %1152 }
 0x31f   : > { %3471 = vpow2.f32 %v1911_v33  ;;  %v4165_v43 = vpop.xlane.xlu0 %770 }
 0x320   : > { %3473 = vpow2.f32 %v740_v48 }
 0x321   : > { %v3468_v53 = vpop.eup %3467 }
 0x322   : > { %v4169_v49 = vpop.xlane.xlu1 %1943  ;;  %v745_v55 = vsel %vm408_vm3, %v3468_v53, 0.0  ;;  %v3470_v37 = vpop.eup %3469 }
 0x323   : > { %v4172_v54 = vpop.xlane.xlu0 %1112  ;;  %746 = vadd.xlane.f32.xlu1 %v745_v55  ;;  %v748_v0 = vsel %vm408_vm3, %v3470_v37, 0.0 }
 0x324   : > { %v1123_v56 = vsub.f32 %v3984_v52, %v4172_v54  ;;  %v1163_v57 = vsub.f32 %v4163_v35, %v4172_v54 }
 0x326   : > { %v1127_v58 = vmul.f32 1.442695, %v1123_v56  ;;  %v4178_v61 = vpop.xlane.xlu1 %1118 }
 0x327   : > { %v4181_v2 = vpop.xlane.xlu0 %1903  ;;  %749 = vadd.xlane.f32.xlu1 %v748_v0  ;;  %v1125_v52 = vsub.f32 %v4019_v12, %v4178_v61 }
 0x328   : > { %3475 = vpow2.f32 %v1127_v58  ;;  %v1908_v6 = vsub.f32 %v4006_v1, %v4181_v2 }
 0x329   : > { %v3472_v13 = vpop.eup %3471  ;;  %v1131_v38 = vmul.f32 1.442695, %v1125_v52 }
 0x32a   : > { %v1915_v28 = vmul.f32 1.442695, %v1908_v6  ;;  %v4189_v31 = vpop.xlane.xlu1 %1503  ;;  %v1920_v22 = vsel %vm408_vm3, %v3472_v13, 0.0  ;;  %v3474_v36 = vpop.eup %3473 }
 0x32b   : > { %v4192_v27 = vpop.xlane.xlu0 %1115  ;;  %1921 = vadd.xlane.f32.xlu0 %v1920_v22  ;;  %v1514_v17 = vsub.f32 %v4024_v20, %v4189_v31  ;;  %v751_v12 = vsel %vm408_vm3, %v3474_v36, 0.0 }
 0x32c   : > { %3477 = vpow2.f32 %v1915_v28  ;;  %v1124_v1 = vsub.f32 %v4030_v24, %v4192_v27 }
 0x32d   : > { %v1518_v37 = vmul.f32 1.442695, %v1514_v17 }
 0x32e   : > { %v1129_v46 = vmul.f32 1.442695, %v1124_v1  ;;  %v4198_v48 = vpop.xlane.xlu1 %1543 }
 0x32f   : > { %v4203_v53 = vpop.xlane.xlu0 %1155  ;;  %752 = vadd.xlane.f32.xlu0 %v751_v12  ;;  %v4751_v32 = vsub.f32 %v4198_v48, %v4189_v31 }
 0x330   : > { %3479 = vpow2.f32 %v1129_v46 }
 0x331   : > { %3481 = vpow2.f32 %v1131_v38 }
 0x332   : > { %v3476_v24 = vpop.eup %3475  ;;  %v4207_v56 = vpop.xlane.xlu1 %1509  ;;  %3483 = vpow2.f32 %v1518_v37 }
 0x333   : > { %v4209_v20 = vpop.xlane.xlu0 %1158  ;;  %v1135_v58 = vsel %vm408_vm3, %v3476_v24, 0.0 }
 0x334   : > { %1136 = vadd.xlane.f32.xlu1 %v1135_v58 }
 0x336   : > { %v3478_v6 = vpop.eup %3477  ;;  %v2249_v13 = vpop.permute.xlu1 %2248 }
 0x337   : > { %v2420_v52 = vcombine.low %v4126_v14, %v2249_v13  ;;  %v2421_v28 = vcombine.high %v4126_v14, %v2249_v13  ;;  %v4216_v22 = vpop.xlane.xlu0 %1121  ;;  %v1926_v36 = vsel %vm408_vm3, %v3478_v6, 0.0  ;;  %v1516_v14 = vsub.f32 %v4045_v30, %v4207_v56 }
 0x338   : > { %v1126_v1 = vsub.f32 %v4056_v39, %v4216_v22  ;;  %1927 = vadd.xlane.f32.xlu0 %v1926_v36 }
 0x339   : > { %v1522_v36 = vmul.f32 1.442695, %v1516_v14 }
 0x33a   : > { %v3480_v38 = vpop.eup %3479  ;;  %v1133_v17 = vmul.f32 1.442695, %v1126_v1 }
 0x33b   : > { %v4221_v46 = vpop.xlane.xlu0 %1161  ;;  %v1138_v12 = vsel %vm408_vm3, %v3480_v38, 0.0  ;;  %v3482_v24 = vpop.eup %3481 }
 0x33c   : > { %3485 = vpow2.f32 %v1133_v17  ;;  %1139 = vadd.xlane.f32.xlu1 %v1138_v12  ;;  %v1141_v39 = vsel %vm408_vm3, %v3482_v24, 0.0  ;;  %v3484_v6 = vpop.eup %3483  ;;  %v4753_v48 = vsub.f32 %v4221_v46, %v4216_v22 }
 0x33d   : > { %v1526_v17 = vsel %vm408_vm3, %v3484_v6, 0.0 }
 0x33f   : > { %v4228_v58 = vpop.xlane.xlu0 %1506 }
 0x340   : > { %v1515_v13 = vsub.f32 %v4066_v42, %v4228_v58  ;;  %1142 = vadd.xlane.f32.xlu1 %v1141_v39  ;;  %v2271_v42 = vunpack.c.l.s4 %v3635_v25 }
 0x342   : > { %v1520_v1 = vmul.f32 1.442695, %v1515_v13  ;;  %v2272_v6 = vunpack.c.0.s8 %v2271_v42 }
 0x343   : > { %v4233_v38 = vpop.xlane.xlu0 %1546 }
 0x344   : > { %3487 = vpow2.f32 %v1520_v1  ;;  %1527 = vadd.xlane.f32.xlu1 %v1526_v17 }
 0x345   : > { %3489 = vpow2.f32 %v1522_v36 }
 0x346   : > { %v3486_v30 = vpop.eup %3485 }
 0x347   : > { %v4238_v23 = vpop.xlane.xlu0 %1549  ;;  %v1144_v24 = vsel %vm408_vm3, %v3486_v30, 0.0  ;;  %v4249_v30 = vsub.s32 %v2272_v6, %v3930_v16 }
 0x348   : > { %1145 = vadd.xlane.f32.xlu0 %v1144_v24 }
 0x349   : > { %v4254_v42 = vrot.slane %v2420_v52, %v4249_v30 }
 0x34b   : > { %v4243_v39 = vpop.xlane.xlu0 %1512 }
 0x34c   : > { %v1517_v13 = vsub.f32 %v4081_v50, %v4243_v39  ;;  %v4257_v50 = vrot.slane %v2421_v28, %v4249_v30 }
 0x34e   : > { %v3488_v1 = vpop.eup %3487  ;;  %v1524_v17 = vmul.f32 1.442695, %v1517_v13 }
 0x34f   : > { %v2241_v47 = vpop.permute.xlu0 %2240  ;;  %v1529_v36 = vsel %vm408_vm3, %v3488_v1, 0.0  ;;  %v3490_v12 = vpop.eup %3489 }
 0x350   : > { %3491 = vpow2.f32 %v1524_v17  ;;  %v2404_v25 = vcombine.low %v4115_v3, %v2241_v47  ;;  %v2405_v24 = vcombine.high %v4115_v3, %v2241_v47  ;;  %1530 = vadd.xlane.f32.xlu1 %v1529_v36  ;;  %v1532_v17 = vsel %vm408_vm3, %v3490_v12, 0.0  ;;  %v2235_v12 = vpop.permute.xlu1 %2234 }
 0x352   : > { %v4260_v13 = vrot.slane %v2404_v25, %v4249_v30  ;;  %v4263_v1 = vrot.slane %v2405_v24, %v4249_v30 }
 0x353   : > { %v2227_v6 = vpop.permute.xlu0 %2226 }
 0x354   : > { %1533 = vadd.xlane.f32.xlu1 %v1532_v17 }
 0x357   : > { %v2243_v36 = vpop.permute.xlu0 %2242 }
 0x358   : > { %v2472_v25 = vcombine.low %v2227_v6, %v2243_v36  ;;  %v2473_v24 = vcombine.high %v2227_v6, %v2243_v36 }
 0x35a   : > { %v3492_v14 = vpop.eup %3491 }
 0x35b   : > { %v1535_v37 = vsel %vm408_vm3, %v3492_v14, 0.0 }
 0x35c   : > { %1536 = vadd.xlane.f32.xlu0 %v1535_v37 }
 0x36b   : > { %v4275_v17 = vpop.xlane.xlu1 %1894 }
 0x36c   : > { %v1905_v3 = vsub.f32 %v4003_v62, %v4275_v17  ;;  %v4288_v62 = vrot.slane %v2472_v25, %v4249_v30 }
 0x36e   : > { %v1909_v47 = vmul.f32 1.442695, %v1905_v3  ;;  %v4291_v3 = vrot.slane %v2473_v24, %v4249_v30  ;;  %v772_v24 = vsub.f32 %v4132_v29, %v4128_v21  ;;  %v4749_v21 = vsub.f32 %v4203_v53, %v4192_v27 }
 0x36f   : > { %v4279_v51 = vpop.xlane.xlu1 %1934  ;;  %v1558_v27 = vmul.f32 1.442695, %v4751_v32 }
 0x370   : > { %3493 = vpow2.f32 %v1909_v47  ;;  %v1169_v29 = vmul.f32 1.442695, %v4749_v21 }
 0x373   : > { %v4283_v52 = vpop.xlane.xlu1 %1900 }
 0x374   : > { %v1907_v6 = vsub.f32 %v4014_v8, %v4283_v52 }
 0x376   : > { %v1913_v14 = vmul.f32 1.442695, %v1907_v6  ;;  %v1167_v6 = vmul.f32 1.442695, %v1163_v57  ;;  %v4750_v57 = vsub.f32 %v4209_v20, %v4178_v61 }
 0x377   : > { %v2251_v37 = vpop.permute.xlu1 %2250 }
 0x378   : > { %3495 = vpow2.f32 %v1913_v14  ;;  %v2488_v36 = vcombine.low %v2235_v12, %v2251_v37  ;;  %v2489_v33 = vcombine.high %v2235_v12, %v2251_v37 }
 0x37a   : > { %v3494_v0 = vpop.eup %3493  ;;  %v4294_v47 = vrot.slane %v2488_v36, %v4249_v30  ;;  %v4297_v28 = vrot.slane %v2489_v33, %v4249_v30 }
 0x37b   : > { %v1917_v8 = vsel %vm408_vm3, %v3494_v0, 0.0 }
 0x37c   : > { %1918 = vadd.xlane.f32.xlu1 %v1917_v8  ;;  %v780_v8 = vmul.f32 1.442695, %v774_v40  ;;  %v778_v40 = vmul.f32 1.442695, %v4748_v18  ;;  %v1173_v18 = vmul.f32 1.442695, %v4753_v48 }
 0x37e   : > { %3497 = vpow2.f32 %v780_v8 }
 0x382   : > { %v3496_v14 = vpop.eup %3495 }
 0x383   : > { %v1923_v37 = vsel %vm408_vm3, %v3496_v14, 0.0 }
 0x384   : > { %1924 = vadd.xlane.f32.xlu1 %v1923_v37  ;;  %v776_v37 = vmul.f32 1.442695, %v772_v24 }
 0x388   : > { %v4309_v33 = vpop.xlane.xlu0 %1552  ;;  %v3498_v55 = vpop.eup %3497 }
 0x389   : > { %v1557_v48 = vsub.f32 %v4309_v33, %v4243_v39 }
 0x38c   : > { %v4311_v0 = vpop.xlane.xlu0 %1940 }
 0x3a9   : > { %v744_v14 = vpop.xlane.xlu0 %743 }
 0x3b0   : > { %v747_v12 = vpop.xlane.xlu1 %746 }
 0x3b4   : > { %v750_v25 = vpop.xlane.xlu1 %749 }
 0x3b5   : > { %3499 = vrcp.f32 %v750_v25 }
 0x3b6   : > { %3501 = vrcp.f32 %v744_v14  ;;  %v4752_v14 = vsub.f32 %v4165_v43, %v4150_v41 }
 0x3b7   : > { %3503 = vpow2.f32 %v776_v37 }
 0x3b8   : > { %3505 = vpow2.f32 %v1167_v6  ;;  %v1922_v35 = vpop.xlane.xlu0 %1921  ;;  %v782_v37 = vmul.f32 1.442695, %v4752_v14 }
 0x3bc   : > { %v753_v53 = vpop.xlane.xlu0 %752 }
 0x3bf   : > { %v3500_v36 = vpop.eup %3499 }
 0x3c0   : > { %v790_v34 = vmul.f32 %v3500_v36, %v3498_v55  ;;  %v3502_v25 = vpop.eup %3501  ;;  %v1171_v55 = vmul.f32 1.442695, %v4750_v57 }
 0x3c1   : > { %v1137_v19 = vpop.xlane.xlu1 %1136  ;;  %v3504_v54 = vpop.eup %3503 }
 0x3c2   : > { %3507 = vrcp.f32 %v1137_v19  ;;  %v788_v24 = vmul.f32 %v3504_v54, %v3502_v25  ;;  %v3506_v36 = vpop.eup %3505  ;;  %v797_v32 = vsel %vm792_vm5, %v790_v34, 0.0 }
 0x3c3   : > { %3509 = vrcp.f32 %v747_v12 }
 0x3c4   : > { %3511 = vpow2.f32 %v778_v40  ;;  %v795_v61 = vsel %vm792_vm5, %v788_v24, 0.0 }
 0x3c5   : > { %3513 = vpow2.f32 %v1169_v29  ;;  %v1928_v40 = vpop.xlane.xlu0 %1927 }
 0x3c9   : > { %v1140_v6 = vpop.xlane.xlu1 %1139 }
 0x3ca   : > { %3515 = vrcp.f32 %v1140_v6  ;;  %v4754_v6 = vsub.f32 %v4233_v38, %v4228_v58  ;;  %v4756_v58 = vsub.f32 %v4238_v23, %v4207_v56 }
 0x3cb   : > { %3517 = vpow2.f32 %v1171_v55 }
 0x3cc   : > { %v3508_v10 = vpop.eup %3507  ;;  %v1560_v24 = vmul.f32 1.442695, %v4754_v6  ;;  %v1562_v38 = vmul.f32 1.442695, %v4756_v58 }
 0x3cd   : > { %v1179_v12 = vmul.f32 %v3508_v10, %v3506_v36  ;;  %v1143_v8 = vpop.xlane.xlu1 %1142  ;;  %v3510_v20 = vpop.eup %3509 }
 0x3ce   : > { %3519 = vrcp.f32 %v1143_v8  ;;  %v3512_v31 = vpop.eup %3511 }
 0x3cf   : > { %v1186_v19 = vsel %vm1183_vm6, %v1179_v12, %v795_v61  ;;  %3521 = vpow2.f32 %v1558_v27  ;;  %v789_v29 = vmul.f32 %v3512_v31, %v3510_v20  ;;  %v3514_v25 = vpop.eup %3513 }
 0x3d0   : > { %3523 = vrcp.f32 %v753_v53  ;;  %v4755_v53 = vsub.f32 %v4158_v45, %v4154_v44 }
 0x3d1   : > { %v1528_v21 = vpop.xlane.xlu1 %1527  ;;  %v796_v57 = vsel %vm792_vm5, %v789_v29, 0.0 }
 0x3d2   : > { %3525 = vrcp.f32 %v1528_v21  ;;  %v1951_v12 = vmul.f32 1.442695, %v4755_v53 }
 0x3d3   : > { %3527 = vpow2.f32 %v782_v37 }
 0x3d4   : > { %v3516_v54 = vpop.eup %3515  ;;  %3529 = vpow2.f32 %v1173_v18 }
 0x3d5   : > { %v1180_v41 = vmul.f32 %v3516_v54, %v3514_v25  ;;  %v1146_v43 = vpop.xlane.xlu0 %1145  ;;  %v3518_v55 = vpop.eup %3517 }
 0x3d6   : > { %3531 = vrcp.f32 %v1146_v43 }
 0x3d7   : > { %v1187_v22 = vsel %vm1183_vm6, %v1180_v41, %v796_v57  ;;  %3533 = vpow2.f32 %v1560_v24  ;;  %v4380_v57 = vsub.s32 1, %v3930_v16 }
 0x3d8   : > { %v3520_v46 = vpop.eup %3519  ;;  %3535 = vrcp.f32 %v1922_v35  ;;  %v1564_v35 = vmul.f32 1.442695, %v1557_v48  ;;  %v4415_v48 = vsub.s32 6, %v3930_v16 }
 0x3d9   : > { %v1181_v36 = vmul.f32 %v3520_v46, %v3518_v55  ;;  %v3522_v10 = vpop.eup %3521  ;;  %v4383_v55 = vsub.s32 0, %v3930_v16 }
 0x3da   : > { %v3524_v27 = vpop.eup %3523 }
 0x3db   : > { %v1188_v8 = vsel %vm1183_vm6, %v1181_v36, %v797_v32 }
 0x3dc   : > { %v3526_v61 = vpop.eup %3525 }
 0x3dd   : > { %v3528_v20 = vpop.eup %3527  ;;  %v1570_v14 = vmul.f32 %v3526_v61, %v3522_v10  ;;  %v1531_v34 = vpop.xlane.xlu1 %1530  ;;  %v4404_v61 = vsub.s32 5, %v3930_v16 }
 0x3de   : > { %v791_v37 = vmul.f32 %v3528_v20, %v3524_v27  ;;  %3537 = vrcp.f32 %v1531_v34  ;;  %v3530_v31 = vpop.eup %3529  ;;  %v4395_v27 = vsub.s32 2, %v3930_v16  ;;  %v4407_v20 = vsub.s32 4, %v3930_v16 }
 0x3df   : > { %3539 = vpow2.f32 %v1951_v12  ;;  %v4367_v44 = vsel %vm1574_vm7, %v1570_v14, %v1186_v19  ;;  %v4757_v19 = vsub.f32 %v4169_v49, %v4181_v2 }
 0x3e0   : > { %v3532_v45 = vpop.eup %3531  ;;  %3541 = vpow2.f32 %v1562_v38  ;;  %v798_v23 = vsel %vm792_vm5, %v791_v37, 0.0 }
 0x3e1   : > { %v1182_v18 = vmul.f32 %v3532_v45, %v3530_v31  ;;  %v1534_v21 = vpop.xlane.xlu1 %1533  ;;  %v3534_v29 = vpop.eup %3533  ;;  %v1955_v54 = vmul.f32 1.442695, %v4757_v19 }
 0x3e2   : > { %3543 = vrcp.f32 %v1534_v21  ;;  %v3536_v25 = vpop.eup %3535 }
 0x3e3   : > { %v1189_v56 = vsel %vm1183_vm6, %v1182_v18, %v798_v23  ;;  %3545 = vpow2.f32 %v1564_v35 }
 0x3e4   : > { %3547 = vrcp.f32 %v1928_v40  ;;  %v4390_v40 = vsub.s32 3, %v3930_v16 }
 0x3e8   : > { %v3538_v41 = vpop.eup %3537 }
 0x3e9   : > { %v3540_v39 = vpop.eup %3539  ;;  %v1571_v33 = vmul.f32 %v3538_v41, %v3534_v29  ;;  %v1537_v43 = vpop.xlane.xlu0 %1536 }
 0x3ea   : > { %v1962_v46 = vmul.f32 %v3540_v39, %v3536_v25  ;;  %3549 = vrcp.f32 %v1537_v43  ;;  %v3542_v6 = vpop.eup %3541 }
 0x3eb   : > { %3551 = vpow2.f32 %v1955_v54  ;;  %v1578_v49 = vsel %vm1574_vm7, %v1571_v33, %v1187_v22  ;;  %v4758_v33 = vsub.f32 %v4279_v51, %v4275_v17 }
 0x3ec   : > { %v3544_v2 = vpop.eup %3543  ;;  %v1969_v24 = vsel %vm1965_vm8, %v1962_v46, %v1578_v49 }
 0x3ed   : > { %v1572_v36 = vmul.f32 %v3544_v2, %v3542_v6  ;;  %v2038_v10 = vrot.slane %v1969_v24, %v4380_v57  ;;  %v2031_v32 = vrot.slane %v1969_v24, %v4383_v55  ;;  %v2052_v22 = vrot.slane %v1969_v24, %v4390_v40  ;;  %v3546_v58 = vpop.eup %3545 }
 0x3ee   : > { %v2045_v12 = vrot.slane %v1969_v24, %v4395_v27  ;;  %v3548_v38 = vpop.eup %3547  ;;  %v2066_v31 = vrot.slane %v1969_v24, %v4404_v61  ;;  %v2059_v45 = vrot.slane %v1969_v24, %v4407_v20  ;;  %v2073_v29 = vrot.slane %v1969_v24, %v4415_v48 }
 0x3ef   : > { %v4399_v53 = vsel %vm1574_vm7, %v1572_v36, %v1188_v8  ;;  %2040 = vbcast.lane.b32.xlu1 %v2038_v10, 256  ;;  %2033 = vbcast.lane.b32.xlu0 %v2031_v32, 256  ;;  %v4410_v8 = vsub.s32 7, %v3930_v16  ;;  %v1949_v43 = vmul.f32 1.442695, %v4758_v33  ;;  %v4759_v2 = vsub.f32 %v4311_v0, %v4283_v52 }
 0x3f1   : > { %v2080_v35 = vrot.slane %v1969_v24, %v4410_v8  ;;  %3553 = vpow2.f32 %v1949_v43  ;;  %v1953_v24 = vmul.f32 1.442695, %v4759_v2  ;;  %v4760_v2 = vmov 0.0  }
 0x3f3   : > { %2054 = vbcast.lane.b32.xlu1 %v2052_v22, 256  ;;  %2047 = vbcast.lane.b32.xlu0 %v2045_v12, 256 }
 0x3f4   : > { %v3550_v14 = vpop.eup %3549 }
 0x3f5   : > { %v3552_v34 = vpop.eup %3551  ;;  %v1573_v37 = vmul.f32 %v3550_v14, %v3546_v58 }
 0x3f6   : > { %v1964_v18 = vmul.f32 %v3552_v34, %v3548_v38 }
 0x3f7   : > { %v1580_v21 = vsel %vm1574_vm7, %v1573_v37, %v1189_v56  ;;  %2068 = vbcast.lane.b32.xlu1 %v2066_v31, 256  ;;  %2061 = vbcast.lane.b32.xlu0 %v2059_v45, 256 }
 0x3f8   : > { %v4421_v23 = vsel %vm1965_vm8, %v1964_v18, %v1580_v21 }
 0x3f9   : > { %v2192_v25 = vrot.slane %v4421_v23, %v4410_v8  ;;  %v2185_v19 = vrot.slane %v4421_v23, %v4415_v48  ;;  %v2150_v56 = vrot.slane %v4421_v23, %v4380_v57  ;;  %v2143_v54 = vrot.slane %v4421_v23, %v4383_v55 }
 0x3fa   : > { %v2164_v41 = vrot.slane %v4421_v23, %v4390_v40  ;;  %v2157_v39 = vrot.slane %v4421_v23, %v4395_v27  ;;  %v2178_v46 = vrot.slane %v4421_v23, %v4404_v61  ;;  %v2171_v6 = vrot.slane %v4421_v23, %v4407_v20 }
 0x3fb   : > { %2082 = vbcast.lane.b32.xlu1 %v2080_v35, 256  ;;  %2075 = vbcast.lane.b32.xlu0 %v2073_v29, 256  ;;  %v3554_v51 = vpop.eup %3553 }
 0x3ff   : > { %2152 = vbcast.lane.b32.xlu1 %v2150_v56, 256  ;;  %2145 = vbcast.lane.b32.xlu0 %v2143_v54, 256 }
 0x403   : > { %2166 = vbcast.lane.b32.xlu1 %v2164_v41, 256  ;;  %2159 = vbcast.lane.b32.xlu0 %v2157_v39, 256 }
 0x407   : > { %2180 = vbcast.lane.b32.xlu1 %v2178_v46, 256  ;;  %2173 = vbcast.lane.b32.xlu0 %v2171_v6, 256 }
 0x409   : > { %v1919_v49 = vpop.xlane.xlu1 %1918 }
 0x40a   : > { %3555 = vrcp.f32 %v1919_v49 }
 0x40b   : > { %3557 = vpow2.f32 %v1953_v24 }
 0x411   : > { %v1925_v36 = vpop.xlane.xlu1 %1924 }
 0x412   : > { %3559 = vrcp.f32 %v1925_v36 }
 0x414   : > { %v3556_v17 = vpop.eup %3555 }
 0x415   : > { %v1961_v10 = vmul.f32 %v3556_v17, %v3554_v51  ;;  %v3558_v58 = vpop.eup %3557 }
 0x417   : > { %v1968_v32 = vsel %vm1965_vm8, %v1961_v10, %v4367_v44 }
 0x418   : > { %v1982_v22 = vrot.slane %v1968_v32, %v4380_v57  ;;  %v1975_v12 = vrot.slane %v1968_v32, %v4383_v55  ;;  %v1996_v52 = vrot.slane %v1968_v32, %v4390_v40  ;;  %v1989_v0 = vrot.slane %v1968_v32, %v4395_v27 }
 0x419   : > { %v2010_v44 = vrot.slane %v1968_v32, %v4404_v61  ;;  %v2003_v37 = vrot.slane %v1968_v32, %v4407_v20  ;;  %v2024_v31 = vrot.slane %v1968_v32, %v4410_v8  ;;  %v2017_v45 = vrot.slane %v1968_v32, %v4415_v48 }
 0x41a   : > { %1984 = vbcast.lane.b32.xlu1 %v1982_v22, 256  ;;  %1977 = vbcast.lane.b32.xlu0 %v1975_v12, 256 }
 0x41c   : > { %v3560_v38 = vpop.eup %3559 }
 0x41d   : > { %v1963_v14 = vmul.f32 %v3560_v38, %v3558_v58 }
 0x41e   : > { %1998 = vbcast.lane.b32.xlu1 %v1996_v52, 256  ;;  %1991 = vbcast.lane.b32.xlu0 %v1989_v0, 256 }
 0x41f   : > { %v1970_v34 = vsel %vm1965_vm8, %v1963_v14, %v4399_v53 }
 0x420   : > { %v2094_v18 = vrot.slane %v1970_v34, %v4380_v57  ;;  %v2087_v21 = vrot.slane %v1970_v34, %v4383_v55  ;;  %v2108_v15 = vrot.slane %v1970_v34, %v4390_v40  ;;  %v2101_v53 = vrot.slane %v1970_v34, %v4395_v27 }
 0x421   : > { %v2122_v35 = vrot.slane %v1970_v34, %v4404_v61  ;;  %v2115_v29 = vrot.slane %v1970_v34, %v4407_v20  ;;  %v2136_v56 = vrot.slane %v1970_v34, %v4410_v8  ;;  %v2129_v57 = vrot.slane %v1970_v34, %v4415_v48 }
 0x422   : > { %2012 = vbcast.lane.b32.xlu1 %v2010_v44, 256  ;;  %2005 = vbcast.lane.b32.xlu0 %v2003_v37, 256  ;;  %v2352_v55 = vcombine.low %v4101_v59, %v4109_v63  ;;  %v3636_v40 = vmov 1934713408   ;;  %v2336_v61 = vcombine.low %v4103_v60, %v4120_v7  ;;  %v2353_v8 = vcombine.high %v4101_v59, %v4109_v63 }
 0x423   : > { %v2303_v27 = vunpack.c.l.s4 %v3636_v40 }
 0x424   : > { %v2360_v20 = vrot.slane %v2352_v55, %v4249_v30  ;;  %v2344_v41 = vrot.slane %v2336_v61, %v4249_v30  ;;  %v2367_v39 = vrot.slane %v2353_v8, %v4249_v30 }
 0x425   : > { %v2304_v54 = vunpack.c.0.s8 %v2303_v27 }
 0x426   : > { %2026 = vbcast.lane.b32.xlu1 %v2024_v31, 256  ;;  %2019 = vbcast.lane.b32.xlu0 %v2017_v45, 256  ;;  %v2369_v48 = vcombine.high %v2344_v41, %v2360_v20  ;;  %v2368_v23 = vcombine.low %v2344_v41, %v2360_v20 }
 0x42a   : > { %2096 = vbcast.lane.b32.xlu1 %v2094_v18, 256  ;;  %2089 = vbcast.lane.b32.xlu0 %v2087_v21, 256 }
 0x42e   : > { %2110 = vbcast.lane.b32.xlu1 %v2108_v15, 256  ;;  %2103 = vbcast.lane.b32.xlu0 %v2101_v53, 256 }
 0x432   : > { %2124 = vbcast.lane.b32.xlu1 %v2122_v35, 256  ;;  %2117 = vbcast.lane.b32.xlu0 %v2115_v29, 256  ;;  %v4761_v29 = vcombine.low %v4288_v62, %v4294_v47 }
 0x436   : > { %2138 = vbcast.lane.b32.xlu1 %v2136_v56, 256  ;;  %2131 = vbcast.lane.b32.xlu0 %v2129_v57, 256  ;;  %v4762_v57 = vcombine.high %v4288_v62, %v4294_v47 }
 0x43a   : > { %2194 = vbcast.lane.b32.xlu1 %v2192_v25, 256  ;;  %2187 = vbcast.lane.b32.xlu0 %v2185_v19, 256  ;;  %v4484_v25 = vsub.s32 %v2304_v54, %v3930_v16  ;;  %v2337_v19 = vcombine.high %v4103_v60, %v4120_v7 }
 0x43c   : > { %v2383_v33 = vrot.slane %v2369_v48, %v4484_v25  ;;  %v2376_v43 = vrot.slane %v2368_v23, %v4484_v25  ;;  %v2351_v49 = vrot.slane %v2337_v19, %v4249_v30  ;;  %v2512_v56 = vrot.slane %v4761_v29, %v4484_v25 }
 0x43d   : > { %v2519_v55 = vrot.slane %v4762_v57, %v4484_v25 }
 0x43e   : > { %v2401_v59 = vcombine.high %v2383_v33, %v4760_v2  ;;  %v2384_v63 = vcombine.low %v2351_v49, %v2367_v39  ;;  %v2385_v16 = vcombine.high %v2351_v49, %v2367_v39  ;;  %v2400_v24 = vcombine.high %v2376_v43, %v4760_v2 }
 0x43f   : > { %v2536_v48 = vcombine.high %v2512_v56, %v4760_v2  ;;  %v2537_v23 = vcombine.high %v2519_v55, %v4760_v2 }
 0x440   : > { %v2392_v32 = vrot.slane %v2384_v63, %v4484_v25  ;;  %v2399_v22 = vrot.slane %v2385_v16, %v4484_v25 }
 0x442   : > { %v2402_v0 = vcombine.high %v2392_v32, %v4760_v2  ;;  %v2403_v14 = vcombine.high %v2399_v22, %v4760_v2 }
 0x461   : > { %v2034_v46 = vpop.permute.xlu0 %2033  ;;  %v2041_v6 = vpop.permute.xlu1 %2040 }
 0x462   : > { %v2548_v7 = vmul.f32 %v2376_v43, %v2034_v46  ;;  %v2549_v10 = vmul.f32 %v2400_v24, %v2041_v6  ;;  %v2906_v43 = vld [vmem:[%s4738_s3] sm:$0xff]  ;;  %v2907_v46 = vld [vmem:[%s4738_s3 + $0x8] sm:$0xff] }
 0x463   : > { %v3398_v16 = vpack.c.bf16 %v2907_v46, %v2906_v43 }
 0x465   : > { %v2048_v36 = vpop.permute.xlu0 %2047  ;;  %v2055_v51 = vpop.permute.xlu1 %2054  ;;  %3400 = vmatprep.subr.msk.bf16.mxu1 %vm3727_vm1, %v3398_v16 }
 0x466   : > { %v2550_v17 = vmul.f32 %v2383_v33, %v2048_v36  ;;  %v2551_v60 = vmul.f32 %v2401_v59, %v2055_v51  ;;  %3403 = vmatpush3.bf16.xpose.msk.msra.mxu1 %vm3727_vm1, %v3398_v16  ;;  %v2909_v16 = vld [vmem:[%s4738_s3 + $0x18] sm:$0xff] }
 0x468   : > { %v2640_v12 = vcombine.low %v2548_v7, %v2550_v17  ;;  %v2648_v58 = vcombine.low %v2549_v10, %v2551_v60 }
 0x469   : > { %v2062_v38 = vpop.permute.xlu0 %2061  ;;  %v2069_v52 = vpop.permute.xlu1 %2068 }
 0x46a   : > { %v2647_v34 = vrot.slane %v2640_v12, %v4249_v30  ;;  %v2655_v44 = vrot.slane %v2648_v58, %v4249_v30  ;;  %v2552_v45 = vmul.f32 %v2392_v32, %v2062_v38  ;;  %v2553_v18 = vmul.f32 %v2402_v0, %v2069_v52 }
 0x46b   : > { %v2284_v38 = vcombine.low %v4117_v5, %v4122_v9  ;;  %v2268_v0 = vcombine.low %v4099_v26, %v4124_v11 }
 0x46c   : > { %v2672_v40 = vcombine.low %v2647_v34, %v2655_v44  ;;  %v2673_v19 = vcombine.high %v2647_v34, %v2655_v44  ;;  %v2285_v44 = vcombine.high %v4117_v5, %v4122_v9 }
 0x46d   : > { %v2076_v37 = vpop.permute.xlu0 %2075  ;;  %v2083_v31 = vpop.permute.xlu1 %2082  ;;  %v2276_v34 = vrot.slane %v2268_v0, %v4249_v30 }
 0x46e   : > { %v2554_v21 = vmul.f32 %v2399_v22, %v2076_v37  ;;  %v2555_v15 = vmul.f32 %v2403_v14, %v2083_v31  ;;  %v4513_v39 = vrot.slane %v2672_v40, %v4484_v25  ;;  %v2687_v7 = vrot.slane %v2673_v19, %v4484_v25 }
 0x46f   : > { %v2292_v14 = vrot.slane %v2284_v38, %v4249_v30 }
 0x470   : > { %v2656_v53 = vcombine.low %v2552_v45, %v2554_v21  ;;  %v2664_v35 = vcombine.low %v2553_v18, %v2555_v15  ;;  %v2269_v21 = vcombine.high %v4099_v26, %v4124_v11  ;;  %v2299_v15 = vrot.slane %v2285_v44, %v4249_v30 }
 0x471   : > { %v2146_v27 = vpop.permute.xlu0 %2145  ;;  %v2153_v61 = vpop.permute.xlu1 %2152  ;;  %v2301_v37 = vcombine.high %v2276_v34, %v2292_v14  ;;  %v2300_v18 = vcombine.low %v2276_v34, %v2292_v14  ;;  %v4764_v14 = vcombine.high %v4260_v13, %v4254_v42 }
 0x472   : > { %v2663_v20 = vrot.slane %v2656_v53, %v4249_v30  ;;  %v2671_v54 = vrot.slane %v2664_v35, %v4249_v30  ;;  %v2564_v33 = vmul.f32 %v2512_v56, %v2146_v27  ;;  %v2565_v49 = vmul.f32 %v2536_v48, %v2153_v61 }
 0x473   : > { %v2315_v53 = vrot.slane %v2301_v37, %v4484_v25  ;;  %v2308_v35 = vrot.slane %v2300_v18, %v4484_v25  ;;  %v2283_v57 = vrot.slane %v2269_v21, %v4249_v30  ;;  %v2451_v34 = vrot.slane %v4764_v14, %v4484_v25 }
 0x474   : > { %v2688_v41 = vcombine.low %v2663_v20, %v2671_v54  ;;  %v2689_v8 = vcombine.high %v2663_v20, %v2671_v54 }
 0x475   : > { %v2160_v62 = vpop.permute.xlu0 %2159  ;;  %v2167_v47 = vpop.permute.xlu1 %2166  ;;  %v2333_v5 = vcombine.high %v2315_v53, %v4760_v2  ;;  %v2316_v9 = vcombine.low %v2283_v57, %v2299_v15  ;;  %v2332_v40 = vcombine.high %v2308_v35, %v4760_v2 }
 0x476   : > { %v4522_v6 = vrot.slane %v2688_v41, %v4484_v25  ;;  %v2566_v59 = vmul.f32 %v2519_v55, %v2160_v62  ;;  %v2567_v63 = vmul.f32 %v2537_v23, %v2167_v47  ;;  %v2703_v24 = vrot.slane %v2689_v8, %v4484_v25 }
 0x477   : > { %v2317_v55 = vcombine.high %v2283_v57, %v2299_v15  ;;  %v2324_v41 = vrot.slane %v2316_v9, %v4484_v25 }
 0x478   : > { %v2776_v36 = vcombine.low %v2564_v33, %v2566_v59  ;;  %v2784_v51 = vcombine.low %v2565_v49, %v2567_v63  ;;  %v2705_v17 = vcombine.high %v4513_v39, %v4522_v6  ;;  %v2704_v60 = vcombine.low %v4513_v39, %v4522_v6  ;;  %v2908_v63 = vld [vmem:[%s4738_s3 + $0x10] sm:$0xff] }
 0x479   : > { %v2706_v58 = vcombine.low %v2687_v7, %v2703_v24  ;;  %v2707_v52 = vcombine.high %v2687_v7, %v2703_v24  ;;  %v4555_v31 = vpop.permute.xlu0 %2173  ;;  %v4557_v45 = vpop.permute.xlu1 %2180  ;;  %v2331_v8 = vrot.slane %v2317_v55, %v4484_v25  ;;  %v2334_v62 = vcombine.high %v2324_v41, %v4760_v2 }
 0x47a   : > { %v4533_v10 = vrot.slane %v2776_v36, %v4249_v30  ;;  %v4536_v32 = vrot.slane %v2784_v51, %v4249_v30  ;;  %2850 = vrot.lane.b32.xlu1 %v2705_v17, %s3637_s12  ;;  %v3404_v7 = vpack.c.bf16 %v2909_v16, %v2908_v63 }
 0x47b   : > { %v2335_v47 = vcombine.high %v2331_v8, %v4760_v2 }
 0x47c   : > { %v2808_v22 = vcombine.low %v4533_v10, %v4536_v32  ;;  %v2809_v12 = vcombine.high %v4533_v10, %v4536_v32  ;;  %3406 = vmatprep.subr.msk.bf16.mxu1 %vm3727_vm1, %v3404_v7 }
 0x47d   : > { %3409 = vmatpush3.bf16.xpose.msk.msra.mxu1 %vm3727_vm1, %v3404_v7 }
 0x47e   : > { %2866 = vrot.lane.b32.xlu1 %v2706_v58, %s3638_s13 }
 0x482   : > { %2882 = vrot.lane.b32.xlu1 %v2707_v52, %s3639_s14  ;;  %v4763_v52 = vcombine.low %v4260_v13, %v4254_v42  ;;  %v2469_v42 = vcombine.high %v2451_v34, %v4760_v2 }
 0x484   : > { %v2444_v0 = vrot.slane %v4763_v52, %v4484_v25 }
 0x48c   : > { %v1978_v29 = vpop.permute.xlu0 %1977  ;;  %v1985_v56 = vpop.permute.xlu1 %1984 }
 0x48d   : > { %v2540_v11 = vmul.f32 %v2308_v35, %v1978_v29  ;;  %v2541_v54 = vmul.f32 %v2332_v40, %v1985_v56  ;;  %v2468_v29 = vcombine.high %v2444_v0, %v4760_v2 }
 0x490   : > { %v1992_v27 = vpop.permute.xlu0 %1991  ;;  %v1999_v61 = vpop.permute.xlu1 %1998 }
 0x491   : > { %v2542_v20 = vmul.f32 %v2315_v53, %v1992_v27  ;;  %v2543_v26 = vmul.f32 %v2333_v5, %v1999_v61  ;;  %v4765_v61 = vcombine.low %v4263_v1, %v4257_v50 }
 0x493   : > { %v2572_v48 = vcombine.low %v2540_v11, %v2542_v20  ;;  %v2580_v23 = vcombine.low %v2541_v54, %v2543_v26  ;;  %v2460_v20 = vrot.slane %v4765_v61, %v4484_v25  ;;  %v4766_v26 = vcombine.high %v4263_v1, %v4257_v50 }
 0x494   : > { %v2006_v19 = vpop.permute.xlu0 %2005  ;;  %v2013_v33 = vpop.permute.xlu1 %2012  ;;  %v4767_v50 = vcombine.low %v4291_v3, %v4297_v28 }
 0x495   : > { %v2579_v43 = vrot.slane %v2572_v48, %v4249_v30  ;;  %v2587_v46 = vrot.slane %v2580_v23, %v4249_v30  ;;  %v2544_v24 = vmul.f32 %v2324_v41, %v2006_v19  ;;  %v2545_v36 = vmul.f32 %v2334_v62, %v2013_v33 }
 0x496   : > { %v2467_v11 = vrot.slane %v4766_v26, %v4484_v25  ;;  %v2528_v1 = vrot.slane %v4767_v50, %v4484_v25 }
 0x497   : > { %v2604_v44 = vcombine.low %v2579_v43, %v2587_v46  ;;  %v2605_v13 = vcombine.high %v2579_v43, %v2587_v46  ;;  %v2470_v46 = vcombine.high %v2460_v20, %v4760_v2 }
 0x498   : > { %v2020_v49 = vpop.permute.xlu0 %2019  ;;  %v2027_v59 = vpop.permute.xlu1 %2026 }
 0x499   : > { %v2546_v51 = vmul.f32 %v2331_v8, %v2020_v49  ;;  %v2547_v17 = vmul.f32 %v2335_v47, %v2027_v59  ;;  %v4596_v56 = vrot.slane %v2604_v44, %v4484_v25  ;;  %v2619_v62 = vrot.slane %v2605_v13, %v4484_v25 }
 0x49a   : > { %v2471_v49 = vcombine.high %v2467_v11, %v4760_v2 }
 0x49b   : > { %v2588_v58 = vcombine.low %v2544_v24, %v2546_v51  ;;  %v2596_v38 = vcombine.low %v2545_v36, %v2547_v17  ;;  %v4768_v24 = vcombine.high %v4291_v3, %v4297_v28 }
 0x49c   : > { %v2090_v37 = vpop.permute.xlu0 %2089  ;;  %v2097_v18 = vpop.permute.xlu1 %2096 }
 0x49d   : > { %v2595_v21 = vrot.slane %v2588_v58, %v4249_v30  ;;  %v2603_v15 = vrot.slane %v2596_v38, %v4249_v30  ;;  %v2556_v57 = vmul.f32 %v2444_v0, %v2090_v37  ;;  %v2557_v40 = vmul.f32 %v2468_v29, %v2097_v18 }
 0x49e   : > { %v2535_v36 = vrot.slane %v4768_v24, %v4484_v25  ;;  %v2538_v0 = vcombine.high %v2528_v1, %v4760_v2  ;;  %v2568_v18 = vmul.f32 %v2528_v1, %v4555_v31 }
 0x49f   : > { %v2620_v53 = vcombine.low %v2595_v21, %v2603_v15  ;;  %v2621_v35 = vcombine.high %v2595_v21, %v2603_v15 }
 0x4a0   : > { %v2104_v5 = vpop.permute.xlu0 %2103  ;;  %v2111_v9 = vpop.permute.xlu1 %2110  ;;  %v2539_v44 = vcombine.high %v2535_v36, %v4760_v2  ;;  %v2569_v28 = vmul.f32 %v2538_v0, %v4557_v45 }
 0x4a1   : > { %v4599_v55 = vrot.slane %v2620_v53, %v4484_v25  ;;  %v2558_v27 = vmul.f32 %v2451_v34, %v2104_v5  ;;  %v2559_v4 = vmul.f32 %v2469_v42, %v2111_v9  ;;  %v2635_v54 = vrot.slane %v2621_v35, %v4484_v25 }
 0x4a3   : > { %v2708_v41 = vcombine.low %v2556_v57, %v2558_v27  ;;  %v2716_v8 = vcombine.low %v2557_v40, %v2559_v4  ;;  %v2637_v48 = vcombine.high %v4596_v56, %v4599_v55  ;;  %v2636_v33 = vcombine.low %v4596_v56, %v4599_v55 }
 0x4a4   : > { %v2118_v23 = vpop.permute.xlu0 %2117  ;;  %v2125_v19 = vpop.permute.xlu1 %2124  ;;  %v2638_v16 = vcombine.low %v2619_v62, %v2635_v54  ;;  %v2639_v37 = vcombine.high %v2619_v62, %v2635_v54 }
 0x4a5   : > { %v2715_v47 = vrot.slane %v2708_v41, %v4249_v30  ;;  %v2723_v43 = vrot.slane %v2716_v8, %v4249_v30  ;;  %2848 = vrot.lane.b32.xlu0 %v2637_v48, %s3637_s12  ;;  %v2560_v7 = vmul.f32 %v2460_v20, %v2118_v23  ;;  %v2561_v58 = vmul.f32 %v2470_v46, %v2125_v19 }
 0x4a6   : > { %v2816_v41 = vrot.slane %v2808_v22, %v4484_v25  ;;  %v2823_v8 = vrot.slane %v2809_v12, %v4484_v25 }
 0x4a7   : > { %v2740_v59 = vcombine.low %v2715_v47, %v2723_v43  ;;  %v2741_v63 = vcombine.high %v2715_v47, %v2723_v43 }
 0x4a8   : > { %v2132_v51 = vpop.permute.xlu0 %2131  ;;  %v2139_v17 = vpop.permute.xlu1 %2138 }
 0x4a9   : > { %v2562_v38 = vmul.f32 %v2467_v11, %v2132_v51  ;;  %v2563_v52 = vmul.f32 %v2471_v49, %v2139_v17  ;;  %2864 = vrot.lane.b32.xlu0 %v2638_v16, %s3638_s13  ;;  %v2748_v2 = vrot.slane %v2740_v59, %v4484_v25  ;;  %v2755_v31 = vrot.slane %v2741_v63, %v4484_v25 }
 0x4ab   : > { %v2724_v14 = vcombine.low %v2560_v7, %v2562_v38  ;;  %v2732_v34 = vcombine.low %v2561_v58, %v2563_v52 }
 0x4ac   : > { %v2188_v3 = vpop.permute.xlu0 %2187  ;;  %v2195_v21 = vpop.permute.xlu1 %2194 }
 0x4ad   : > { %v2731_v15 = vrot.slane %v2724_v14, %v4249_v30  ;;  %v2739_v53 = vrot.slane %v2732_v34, %v4249_v30  ;;  %v2570_v35 = vmul.f32 %v2535_v36, %v2188_v3  ;;  %v2571_v29 = vmul.f32 %v2539_v44, %v2195_v21  ;;  %2880 = vrot.lane.b32.xlu0 %v2639_v37, %s3639_s14 }
 0x4af   : > { %v2756_v42 = vcombine.low %v2731_v15, %v2739_v53  ;;  %v2757_v13 = vcombine.high %v2731_v15, %v2739_v53  ;;  %v2792_v57 = vcombine.low %v2568_v18, %v2570_v35  ;;  %v2800_v5 = vcombine.low %v2569_v28, %v2571_v29 }
 0x4b1   : > { %v2764_v45 = vrot.slane %v2756_v42, %v4484_v25  ;;  %v2771_v9 = vrot.slane %v2757_v13, %v4484_v25  ;;  %v2799_v40 = vrot.slane %v2792_v57, %v4249_v30  ;;  %v2807_v27 = vrot.slane %v2800_v5, %v4249_v30 }
 0x4b3   : > { %v2824_v4 = vcombine.low %v2799_v40, %v2807_v27  ;;  %v2825_v61 = vcombine.high %v2799_v40, %v2807_v27  ;;  %v2773_v20 = vcombine.high %v2748_v2, %v2764_v45  ;;  %v2774_v26 = vcombine.low %v2755_v31, %v2771_v9 }
 0x4b4   : > { %v2775_v11 = vcombine.high %v2755_v31, %v2771_v9  ;;  %v2772_v54 = vcombine.low %v2748_v2, %v2764_v45 }
 0x4b5   : > { %v2832_v48 = vrot.slane %v2824_v4, %v4484_v25  ;;  %v2839_v30 = vrot.slane %v2825_v61, %v4484_v25  ;;  %2852 = vrot.lane.b32.xlu0 %v2773_v20, %s3637_s12 }
 0x4b7   : > { %v2841_v23 = vcombine.high %v2816_v41, %v2832_v48  ;;  %v2842_v19 = vcombine.low %v2823_v8, %v2839_v30  ;;  %v2843_v62 = vcombine.high %v2823_v8, %v2839_v30  ;;  %v2840_v47 = vcombine.low %v2816_v41, %v2832_v48 }
 0x4b9   : > { %2868 = vrot.lane.b32.xlu0 %v2774_v26, %s3638_s13  ;;  %2854 = vrot.lane.b32.xlu1 %v2841_v23, %s3637_s12 }
 0x4bd   : > { %2884 = vrot.lane.b32.xlu0 %v2775_v11, %s3639_s14  ;;  %2870 = vrot.lane.b32.xlu1 %v2842_v19, %s3638_s13  ;;  %s3565_s13 = sshll.u32 %s3640_s19, 4  ;;  %s3566_s13 = int_to_ptr.vmem [resolvable:$false] %s3565_s13 }
 0x4be   : > { %p3568_p0 = scmp.lt.s32.totalorder %s4684_s5, %s3566_s13 }
 0x4c1   : > { %2886 = vrot.lane.b32.xlu1 %v2843_v62, %s3639_s14  ;;  %s3567_s14 = scalar_lea.vmem %s3566_s13, 1024 }
 0x4c2   : > { %p3569_p1 = scmp.lt.s32.totalorder %s3567_s14, %s3561_s11 }
 0x4c4   : > { %p3570_p2 = por %p3569_p1, %p3568_p0 }
 0x4c6   : > { %p3571_p3 = pnand %p3570_p2, %p3564_p13 }
 0x4ec   : > { %v2851_v10 = vpop.permute.xlu1 %2850 }
 0x4ed   : > { %v2893_v50 = vsel %vm408_vm3, %v2704_v60, %v2851_v10 }
 0x4f0   : > { %v2867_v22 = vpop.permute.xlu1 %2866 }
 0x4f1   : > { %v2898_v49 = vsel %vm2896_vm9, %v2893_v50, %v2867_v22 }
 0x4f4   : > { %v2883_v12 = vpop.permute.xlu1 %2882 }
 0x4f5   : > { %v2903_v63 = vsel %vm2901_vm10, %v2898_v49, %v2883_v12 }
 0x517   : > { %v2849_v32 = vpop.permute.xlu0 %2848 }
 0x518   : > { %v2892_v43 = vsel %vm408_vm3, %v2636_v33, %v2849_v32 }
 0x51b   : > { %v2865_v25 = vpop.permute.xlu0 %2864 }
 0x51c   : > { %v2897_v1 = vsel %vm2896_vm9, %v2892_v43, %v2865_v25 }
 0x51f   : > { %v2881_v46 = vpop.permute.xlu0 %2880 }
 0x520   : > { %v2902_v59 = vsel %vm2901_vm10, %v2897_v1, %v2881_v46 }
 0x521   : > { %3356 = vmatprep.mubr.msk.f32.mxu1 %vm234_vm0, %v2902_v59 }
 0x522   : > { %3357 = vmatmul.mubr.msk.f32.vlgmr.msra.gmra.mrb[24].mxu1 %vm234_vm0, %v2903_v63 }
 0x527   : > { %v2853_v56 = vpop.permute.xlu0 %2852 }
 0x528   : > { %v2894_v39 = vsel %vm408_vm3, %v2772_v54, %v2853_v56 }
 0x52b   : > { %v2869_v55 = vpop.permute.xlu0 %2868  ;;  %v2855_v33 = vpop.permute.xlu1 %2854 }
 0x52c   : > { %v2899_v6 = vsel %vm2896_vm9, %v2894_v39, %v2869_v55  ;;  %v2895_v36 = vsel %vm408_vm3, %v2840_v47, %v2855_v33 }
 0x52f   : > { %v2885_v60 = vpop.permute.xlu0 %2884  ;;  %v2871_v16 = vpop.permute.xlu1 %2870 }
 0x530   : > { %v2904_v24 = vsel %vm2901_vm10, %v2899_v6, %v2885_v60  ;;  %v2900_v51 = vsel %vm2896_vm9, %v2895_v36, %v2871_v16 }
 0x531   : > { %3359 = vmatprep.mubr.msk.f32.mxu1 %vm234_vm0, %v2904_v24 }
 0x533   : > { %v2887_v17 = vpop.permute.xlu1 %2886 }
 0x534   : > { %v2905_v7 = vsel %vm2901_vm10, %v2900_v51, %v2887_v17 }
 0x535   : > { %3360 = vmatmul.mubr.msk.f32.gmra.mrb[26].mxu1 %vm234_vm0, %v2905_v7 }
 0x5f5   : > { %v3358_v58 = vpop.f32.mrb[24].mxu1 }
 0x5f6   : > { %3020 = vst.msk [vmem:[%s205_s30 + $0x8] sm:$0xff] %vm234_vm0, %v3358_v58  ;;  %v3000_v38 = vpop.f32.mrb[25].mxu1 }
 0x5f7   : > { %3019 = vst.msk [vmem:[%s205_s30] sm:$0xff] %vm234_vm0, %v3000_v38 }
 0x608   : > { %v3361_v52 = vpop.f32.mrb[26].mxu1 }
 0x609   : > { %3022 = vst.msk [vmem:[%s205_s30 + $0x18] sm:$0xff] %vm234_vm0, %v3361_v52  ;;  %v3010_v0 = vpop.f32.mrb[27].mxu1 }
 0x60a   : > { %3021 = vst.msk [vmem:[%s205_s30 + $0x10] sm:$0xff] %vm234_vm0, %v3010_v0 }
 0x60b   : > { %3574 = shalt.err (!%p3571_p3)
}
 0x60c   : > { %s3575_s20 = scalar_lea.hbm %s4689_s9, 512  ;;  %s3579_s27 = scalar_lea.hbm %s4739_s4, 1024 }
 0x60d   : > { %p3576_p4 = scmp.ne.s32.totalorder %s4689_s9, %s3575_s20  ;;  %p3580_p9 = scmp.lt.u32.totalorder %s4689_s9, %s4739_s4 }
 0x60e   : > { %p3581_p10 = scmp.lt.u32.totalorder %s3579_s27, %s3575_s20  ;;  %p3583_p12 = scmp.lt.u32.totalorder %s3575_s20, %s4689_s9 }
 0x60f   : > { %p3577_p7 = pnand %p3576_p4, %p3705_p5 }
 0x610   : > { %p3582_p11 = por %p3581_p10, %p3580_p9 }
 0x611   : > { %p3578_p8 = pneg %p3577_p7 }
 0x612   : > { %p3584_p13 = por %p3583_p12, %p3582_p11 }
 0x614   : > { %p3585_p0 = pnand %p3584_p13, %p3578_p8 }
 0x616   : > { %3588 = shalt.err (!%p3585_p0)
}
 0x617   : > { %s3641_s30 = smov 128  }
 0x618   : > { %3410 = dma.vmem_to_hbm [thread:$0]  (%p3705_p5), %s4684_s5, 512, %s4689_s9, %s4693_s10, %s3641_s30, %s3641_s30, %s3637_s12  }
 0x619 PF: > { %p3416_p1 = scmp.ge.s32.totalorder %s3623_s18, 2  ;;  %s3052_s6 = sand.u32 1, %s3611_s15  }
 0x61a   : > { %s3053_s8 = scalar_lea.sflag [#allocation3], %s3052_s6 }
 0x61b   : > { %p3413_p2 = pnand %p3416_p1, %p3709_p6 }
 0x61d   : > { %3606 = dma.done.wait (!%p3413_p2), %s3053_s8, 512  }
 0x61e   : > { %3608 = vsyncadd (!%p3413_p2), %s3053_s8, 4294966784  ;;  %p14_p3 = scmp.ge.s32.totalorder %s3692_s21, 4   ;;  %s4769_s15 = smov %s3615_s16 }
 0x61f   : > { %s4770_s16 = smov %s3619_s17  ;;  %s4771_s17 = smov %s3703_s24 }
 0x620   : > { %s4772_s18 = smov %s3692_s21  ;;  %16 = sbr.rel (!%p14_p3) target bundleno = 3 (0x3), region = 74 }
 0x627   :  { %3058 = vsyncpa [#allocation3], 1 }
 0x628   :  { %3060 = vsyncpa [#allocation3 + $0x1], 1 }

</bundles_post_ra>
